<compile_context>
chip_gen: v7x
topology: tpu7x:2x2x1
jax: 0.10.0
libtpu: 0.0.40
codegen_flags: <defaults>
</compile_context>

<pallas_src>
import numpy as np
import jax
import jax.numpy as jnp
from jax import lax
from jax.experimental import pallas as pl
from jax.experimental.pallas import tpu as pltpu

# Model dimensions (concrete instantiation of the generic module).
N_BATCH = 2
H = 16
W = 16
C_IN = 4           # conv1 in-channels
C_MID = 8          # conv1 out / conv2 in / conv2 out channels
N_CLASSES = 10
O_PAD = 16         # classes padded to next multiple of 8 (NOT 128: saves HBM)


# ---------------------------------------------------------------------------
# Fused forward kernel
# ---------------------------------------------------------------------------
def fused_forward_kernel(x_ref, w1_ref, b1_ref, w2_ref, b2_ref,
                         wfc_ref, bfc_ref, o_ref,
                         xpad1_ref, xpad2_ref, cls_ref):
    # x_ref   : (N, H, W*C_IN)  f32   input rows, (w, ci) flattened in lanes
    # w1_ref  : (3*W*C_IN,  W*C_MID)  bf16  conv1 width-Toeplitz, kh folded in K
    # w2_ref  : (3*W*C_MID, W*C_MID)  bf16  conv2 width-Toeplitz, kh folded in K
    # b1_ref/b2_ref : (1, W*C_MID)    f32   biases tiled over w
    # wfc_ref : (H*2*W*C_MID, O_PAD)  bf16  classifier, concat+NCHW-flatten baked in
    # bfc_ref : (1, O_PAD)            f32
    # o_ref   : (N, O_PAD)            f32
    # xpad1_ref: (N, H+2, W*C_IN) f32 scratch (H halo rows)
    # xpad2_ref: (N, H+2, W*C_MID) f32 scratch
    # cls_ref : (N, H*2*W*C_MID)  f32 scratch (K-flattened classifier LHS)
    n, hp2, wc1 = xpad1_ref.shape
    h_sz = hp2 - 2
    wc2 = xpad2_ref.shape[2]               # W*C_MID == 128
    nh = n * h_sz

    # ---- conv1 + bias + ReLU: ONE matmul, kh folded into K -----------------
    # padding=1: H handled by zero halo rows of the scratch,
    #            W handled by the zero bands of the Toeplitz weights.
    zero1 = jnp.zeros((n, 1, wc1), jnp.float32)
    xpad1_ref[:, 0:1, :] = zero1                       # top halo only
    xpad1_ref[:, h_sz + 1:h_sz + 2, :] = zero1         # bottom halo only
    xpad1_ref[:, 1:h_sz + 1, :] = x_ref[...]
    lhs1 = jnp.concatenate(
        [xpad1_ref[:, kh:kh + h_sz, :].reshape(nh, wc1) for kh in range(3)],
        axis=-1).astype(jnp.bfloat16)                  # (32, 192) im2col over kh
    acc1 = jnp.dot(lhs1, w1_ref[...], preferred_element_type=jnp.float32)
    feat1 = jnp.maximum(acc1 + b1_ref[...], 0.0)       # (32, 128) f32

    # ---- conv2 + bias + ReLU: ONE matmul, kh folded into K -----------------
    f1_3d = feat1.reshape(n, h_sz, wc2)
    zero2 = jnp.zeros((n, 1, wc2), jnp.float32)
    xpad2_ref[:, 0:1, :] = zero2
    xpad2_ref[:, h_sz + 1:h_sz + 2, :] = zero2
    xpad2_ref[:, 1:h_sz + 1, :] = f1_3d
    lhs2 = jnp.concatenate(
        [xpad2_ref[:, kh:kh + h_sz, :].reshape(nh, wc2) for kh in range(3)],
        axis=-1).astype(jnp.bfloat16)                  # (32, 384)
    acc2 = jnp.dot(lhs2, w2_ref[...], preferred_element_type=jnp.float32)
    feat2 = jnp.maximum(acc2 + b2_ref[...], 0.0)       # (32, 128) f32

    # ---- classifier over cat([feat1, feat2], C), NCHW flatten ---------------
    # Single (N, H*2*W*C) x (H*2*W*C, O_PAD) matmul.  The concat + NCHW flatten
    # permutation is baked into wfc on the host; here we only lay the feats out
    # K-flat with static, 128-lane-aligned stores (no big reshape relayout).
    f2_3d = feat2.reshape(n, h_sz, wc2)
    for h in range(h_sz):
        base = h * 2 * wc2
        cls_ref[:, base:base + wc2] = f1_3d[:, h, :]
        cls_ref[:, base + wc2:base + 2 * wc2] = f2_3d[:, h, :]
    lhs_c = cls_ref[...].astype(jnp.bfloat16)          # (2, 4096)
    out = jnp.dot(lhs_c, wfc_ref[...], preferred_element_type=jnp.float32)
    o_ref[...] = out + bfc_ref[...]


# ---------------------------------------------------------------------------
# Wrapper
# ---------------------------------------------------------------------------
def residual_model_forward(x_nchw, params):
    n, c_in, h_sz, w_sz = x_nchw.shape
    # Single tiny layout op on the 8 KB input: NCHW -> (N, H, W*Cin) rows.
    x_rows = jnp.transpose(x_nchw, (0, 2, 3, 1)).reshape(n, h_sz, w_sz * c_in)
    x_rows = x_rows.astype(jnp.float32)
    wc1 = w_sz * c_in
    wc2 = w_sz * C_MID

    vmem_spec = pl.BlockSpec(memory_space=pltpu.MemorySpace.VMEM)
    out_pad = pl.pallas_call(
        fused_forward_kernel,
        out_shape=jax.ShapeDtypeStruct((n, O_PAD), jnp.float32),
        in_specs=[vmem_spec] * 7,
        out_specs=vmem_spec,
        scratch_shapes=[
            pltpu.VMEM((n, h_sz + 2, wc1), jnp.float32),       # padded conv1 input
            pltpu.VMEM((n, h_sz + 2, wc2), jnp.float32),       # padded conv2 input
            pltpu.VMEM((n, h_sz * 2 * wc2), jnp.float32),      # K-flat classifier LHS
        ],
    )(x_rows, params["w1_cat"], params["b1_tiled"],
      params["w2_cat"], params["b2_tiled"],
      params["wfc_flat"], params["bfc_pad"])
    return out_pad[:, :N_CLASSES]


# ---------------------------------------------------------------------------
# One-time host-side weight preparation (PyTorch layout -> kernel layout)
# ---------------------------------------------------------------------------
def _toeplitz_conv_weight(w_pt, width):
    """(Cout, Cin, 3, 3) PyTorch conv weight -> (3*width*Cin, width*Cout) bf16
    width-Toeplitz matmul weight with the 3 kh taps stacked along K
    (W padding=1 folded into zero bands)."""
    w_np = np.asarray(w_pt, np.float32)
    c_out, c_in, k_h, k_w = w_np.shape
    toep = np.zeros((k_h, width * c_in, width * c_out), np.float32)
    for kh in range(k_h):
        for kw in range(k_w):
            tap = w_np[:, :, kh, kw].T                      # (Cin, Cout)
            for w in range(width):
                wp = w + kw - 1                             # input column index
                if 0 <= wp < width:
                    toep[kh, wp * c_in:(wp + 1) * c_in,
                         w * c_out:(w + 1) * c_out] = tap
    w_cat = toep.reshape(k_h * width * c_in, width * c_out)  # kh folded into K
    return jnp.asarray(w_cat, jnp.bfloat16)


def _classifier_weight(wfc_pt, bfc, height, width, c_mid):
    """Linear(2*C*H*W -> 10) over the NCHW-flattened cat([feat1, feat2]) ->
    K-flattened bf16 weight (H*2*W*C, O_PAD) matching the kernel's classifier
    LHS order k = ((h*2 + s)*W + w)*C + c (s=0: feat1, s=1: feat2), plus the
    O_PAD-padded f32 bias.  Torch flat index is (s*C + c)*H*W + h*W + w."""
    wfc_np = np.asarray(wfc_pt, np.float32)                    # (10, 2*C*H*W)
    n_cls = wfc_np.shape[0]
    wfc_r = wfc_np.reshape(n_cls, 2, c_mid, height, width)     # [o, s, c, h, w]
    t = np.transpose(wfc_r, (3, 1, 4, 2, 0))                   # [h, s, w, c, o]
    wk = t.reshape(height * 2 * width * c_mid, n_cls)          # [k, o]
    wk_pad = np.zeros((wk.shape[0], O_PAD), np.float32)
    wk_pad[:, :n_cls] = wk
    bfc_pad = np.zeros((1, O_PAD), np.float32)
    bfc_pad[0, :n_cls] = np.asarray(bfc, np.float32)
    return jnp.asarray(wk_pad, jnp.bfloat16), jnp.asarray(bfc_pad)


def init_params():
    """Deterministic synthetic parameters in PyTorch layout, then converted
    (one-time, host side) to the fused-kernel layout."""
    k = jax.random.PRNGKey(0)
    k1, k2, k3, k4, k5, k6 = jax.random.split(k, 6)
    w1_pt = 0.05 * jax.random.normal(k1, (C_MID, C_IN, 3, 3), jnp.float32)
    w2_pt = 0.05 * jax.random.normal(k2, (C_MID, C_MID, 3, 3), jnp.float32)
    b1 = 0.05 * jax.random.normal(k3, (C_MID,), jnp.float32)
    b2 = 0.05 * jax.random.normal(k4, (C_MID,), jnp.float32)
    wfc_pt = 0.01 * jax.random.normal(k5, (N_CLASSES, 2 * C_MID * H * W), jnp.float32)
    bfc = 0.01 * jax.random.normal(k6, (N_CLASSES,), jnp.float32)

    wfc_flat, bfc_pad = _classifier_weight(wfc_pt, bfc, H, W, C_MID)
    params = {
        "w1_cat": _toeplitz_conv_weight(w1_pt, W),                            # (192, 128) bf16
        "b1_tiled": jnp.asarray(np.tile(np.asarray(b1), W).reshape(1, W * C_MID),
                                jnp.float32),
        "w2_cat": _toeplitz_conv_weight(w2_pt, W),                            # (384, 128) bf16
        "b2_tiled": jnp.asarray(np.tile(np.asarray(b2), W).reshape(1, W * C_MID),
                                jnp.float32),
        "wfc_flat": wfc_flat,                                                 # (4096, 16) bf16
        "bfc_pad": bfc_pad,                                                   # (1, 16) f32
    }
    torch_params = (w1_pt, b1, w2_pt, b2, wfc_pt, bfc)
    return params, torch_params


# ---------------------------------------------------------------------------
# Pure-JAX (XLA) reference of the PyTorch forward, for a correctness check
# ---------------------------------------------------------------------------
def reference_forward(x_nchw, torch_params):
    w1_pt, b1, w2_pt, b2, wfc_pt, bfc = torch_params
    dn = ("NCHW", "OIHW", "NCHW")
    y1 = lax.conv_general_dilated(x_nchw, w1_pt, (1, 1), ((1, 1), (1, 1)),
                                  dimension_numbers=dn)
    f1 = jnp.maximum(y1 + b1[None, :, None, None], 0.0)
    y2 = lax.conv_general_dilated(f1, w2_pt, (1, 1), ((1, 1), (1, 1)),
                                  dimension_numbers=dn)
    f2 = jnp.maximum(y2 + b2[None, :, None, None], 0.0)
    cat = jnp.concatenate([f1, f2], axis=1)          # torch.cat(outputs, 1)
    flat = cat.reshape(cat.shape[0], -1)             # input.view(N, -1), NCHW order
    return flat @ wfc_pt.T + bfc[None, :]


if __name__ == "__main__":
    params, torch_params = init_params()
    x = jax.random.normal(jax.random.PRNGKey(0), (N_BATCH, C_IN, H, W), jnp.float32)

    out = jax.jit(residual_model_forward)(x, params)
    out = jax.block_until_ready(out)
    assert out.shape == (N_BATCH, N_CLASSES), out.shape
    assert bool(jnp.all(jnp.isfinite(out)))

    ref = reference_forward(x, torch_params)
    # bf16 weight/LHS storage (f32 accumulation) -> slightly relaxed tolerance.
    np.testing.assert_allclose(np.asarray(out), np.asarray(ref),
                               rtol=2e-2, atol=2e-2)
    print("KERNEL_OK")
</pallas_src>

<mosaic_0001>
module attributes {stable_mosaic.version = 11 : i64} {
  func.func @fused_forward_kernel(%arg0: memref<2x16x64xf32, #tpu.memory_space<vmem>>, %arg1: memref<192x128xbf16, #tpu.memory_space<vmem>>, %arg2: memref<1x128xf32, #tpu.memory_space<vmem>>, %arg3: memref<384x128xbf16, #tpu.memory_space<vmem>>, %arg4: memref<1x128xf32, #tpu.memory_space<vmem>>, %arg5: memref<4096x16xbf16, #tpu.memory_space<vmem>>, %arg6: memref<1x16xf32, #tpu.memory_space<vmem>>, %arg7: memref<2x16xf32, #tpu.memory_space<vmem>>, %arg8: memref<2x18x64xf32, #tpu.memory_space<vmem>>, %arg9: memref<2x18x128xf32, #tpu.memory_space<vmem>>, %arg10: memref<2x4096xf32, #tpu.memory_space<vmem>>) attributes {dimension_semantics = [], scalar_prefetch = 0 : i64, scratch_operands = 3 : i64, tpu.core_type = #tpu.core_type<tc>} {
    %cst = arith.constant 0.000000e+00 : f32
    %0 = vector.broadcast %cst : f32 to vector<2x1x64xf32>
    %c0 = arith.constant 0 : index
    %c0_0 = arith.constant 0 : index
    %c0_1 = arith.constant 0 : index
    %1 = vector.load %arg8[%c0, %c0_0, %c0_1] : memref<2x18x64xf32, #tpu.memory_space<vmem>>, vector<2x1x64xf32>
    tpu.vector_store %arg8[%c0, %c0_0, %c0_1], %0 {strides = array<i32>} : memref<2x18x64xf32, #tpu.memory_space<vmem>>, vector<2x1x64xf32>,
    %c0_2 = arith.constant 0 : index
    %c17 = arith.constant 17 : index
    %c0_3 = arith.constant 0 : index
    %2 = vector.load %arg8[%c0_2, %c17, %c0_3] : memref<2x18x64xf32, #tpu.memory_space<vmem>>, vector<2x1x64xf32>
    tpu.vector_store %arg8[%c0_2, %c17, %c0_3], %0 {strides = array<i32>} : memref<2x18x64xf32, #tpu.memory_space<vmem>>, vector<2x1x64xf32>,
    %c0_4 = arith.constant 0 : index
    %c0_5 = arith.constant 0 : index
    %c0_6 = arith.constant 0 : index
    %3 = vector.load %arg0[%c0_4, %c0_5, %c0_6] : memref<2x16x64xf32, #tpu.memory_space<vmem>>, vector<2x16x64xf32>
    %c0_7 = arith.constant 0 : index
    %c1 = arith.constant 1 : index
    %c0_8 = arith.constant 0 : index
    %4 = vector.load %arg8[%c0_7, %c1, %c0_8] : memref<2x18x64xf32, #tpu.memory_space<vmem>>, vector<2x16x64xf32>
    tpu.vector_store %arg8[%c0_7, %c1, %c0_8], %3 {strides = array<i32>} : memref<2x18x64xf32, #tpu.memory_space<vmem>>, vector<2x16x64xf32>,
    %c0_9 = arith.constant 0 : index
    %c0_10 = arith.constant 0 : index
    %c0_11 = arith.constant 0 : index
    %5 = vector.load %arg8[%c0_9, %c0_10, %c0_11] : memref<2x18x64xf32, #tpu.memory_space<vmem>>, vector<2x16x64xf32>
    %6 = vector.shape_cast %5 : vector<2x16x64xf32> to vector<32x64xf32>
    %c0_12 = arith.constant 0 : index
    %c1_13 = arith.constant 1 : index
    %c0_14 = arith.constant 0 : index
    %7 = vector.load %arg8[%c0_12, %c1_13, %c0_14] : memref<2x18x64xf32, #tpu.memory_space<vmem>>, vector<2x16x64xf32>
    %8 = vector.shape_cast %7 : vector<2x16x64xf32> to vector<32x64xf32>
    %c0_15 = arith.constant 0 : index
    %c2 = arith.constant 2 : index
    %c0_16 = arith.constant 0 : index
    %9 = vector.load %arg8[%c0_15, %c2, %c0_16] : memref<2x18x64xf32, #tpu.memory_space<vmem>>, vector<2x16x64xf32>
    %10 = vector.shape_cast %9 : vector<2x16x64xf32> to vector<32x64xf32>
    %11 = tpu.concatenate %6, %8, %10 in 1 : vector<32x64xf32>, vector<32x64xf32>, vector<32x64xf32> -> vector<32x192xf32>
    %12 = arith.truncf %11 : vector<32x192xf32> to vector<32x192xbf16>
    %c0_17 = arith.constant 0 : index
    %c0_18 = arith.constant 0 : index
    %13 = vector.load %arg1[%c0_17, %c0_18] : memref<192x128xbf16, #tpu.memory_space<vmem>>, vector<192x128xbf16>
    %cst_19 = arith.constant dense<0.000000e+00> : vector<32x128xf32>
    %14 = tpu.matmul %12, %13, %cst_19 {dimension_numbers = #tpu.dot_dimension_numbers<[1], [0], [0], [1], [0, 0, 1, 1], [], []>} : vector<32x192xbf16>, vector<192x128xbf16>, vector<32x128xf32> -> vector<32x128xf32>
    %c0_20 = arith.constant 0 : index
    %c0_21 = arith.constant 0 : index
    %15 = vector.load %arg2[%c0_20, %c0_21] : memref<1x128xf32, #tpu.memory_space<vmem>>, vector<1x128xf32>
    %16 = vector.broadcast %15 : vector<1x128xf32> to vector<32x128xf32>
    %17 = arith.addf %14, %16 : vector<32x128xf32>
    %cst_22 = arith.constant 0.000000e+00 : f32
    %18 = vector.broadcast %cst_22 : f32 to vector<32x128xf32>
    %19 = arith.maximumf %17, %18 : vector<32x128xf32>
    %20 = vector.shape_cast %19 : vector<32x128xf32> to vector<2x16x128xf32>
    %cst_23 = arith.constant 0.000000e+00 : f32
    %21 = vector.broadcast %cst_23 : f32 to vector<2x1x128xf32>
    %c0_24 = arith.constant 0 : index
    %c0_25 = arith.constant 0 : index
    %c0_26 = arith.constant 0 : index
    %22 = vector.load %arg9[%c0_24, %c0_25, %c0_26] : memref<2x18x128xf32, #tpu.memory_space<vmem>>, vector<2x1x128xf32>
    tpu.vector_store %arg9[%c0_24, %c0_25, %c0_26], %21 {strides = array<i32>} : memref<2x18x128xf32, #tpu.memory_space<vmem>>, vector<2x1x128xf32>,
    %c0_27 = arith.constant 0 : index
    %c17_28 = arith.constant 17 : index
    %c0_29 = arith.constant 0 : index
    %23 = vector.load %arg9[%c0_27, %c17_28, %c0_29] : memref<2x18x128xf32, #tpu.memory_space<vmem>>, vector<2x1x128xf32>
    tpu.vector_store %arg9[%c0_27, %c17_28, %c0_29], %21 {strides = array<i32>} : memref<2x18x128xf32, #tpu.memory_space<vmem>>, vector<2x1x128xf32>,
    %c0_30 = arith.constant 0 : index
    %c1_31 = arith.constant 1 : index
    %c0_32 = arith.constant 0 : index
    %24 = vector.load %arg9[%c0_30, %c1_31, %c0_32] : memref<2x18x128xf32, #tpu.memory_space<vmem>>, vector<2x16x128xf32>
    tpu.vector_store %arg9[%c0_30, %c1_31, %c0_32], %20 {strides = array<i32>} : memref<2x18x128xf32, #tpu.memory_space<vmem>>, vector<2x16x128xf32>,
    %c0_33 = arith.constant 0 : index
    %c0_34 = arith.constant 0 : index
    %c0_35 = arith.constant 0 : index
    %25 = vector.load %arg9[%c0_33, %c0_34, %c0_35] : memref<2x18x128xf32, #tpu.memory_space<vmem>>, vector<2x16x128xf32>
    %26 = vector.shape_cast %25 : vector<2x16x128xf32> to vector<32x128xf32>
    %c0_36 = arith.constant 0 : index
    %c1_37 = arith.constant 1 : index
    %c0_38 = arith.constant 0 : index
    %27 = vector.load %arg9[%c0_36, %c1_37, %c0_38] : memref<2x18x128xf32, #tpu.memory_space<vmem>>, vector<2x16x128xf32>
    %28 = vector.shape_cast %27 : vector<2x16x128xf32> to vector<32x128xf32>
    %c0_39 = arith.constant 0 : index
    %c2_40 = arith.constant 2 : index
    %c0_41 = arith.constant 0 : index
    %29 = vector.load %arg9[%c0_39, %c2_40, %c0_41] : memref<2x18x128xf32, #tpu.memory_space<vmem>>, vector<2x16x128xf32>
    %30 = vector.shape_cast %29 : vector<2x16x128xf32> to vector<32x128xf32>
    %31 = tpu.concatenate %26, %28, %30 in 1 : vector<32x128xf32>, vector<32x128xf32>, vector<32x128xf32> -> vector<32x384xf32>
    %32 = arith.truncf %31 : vector<32x384xf32> to vector<32x384xbf16>
    %c0_42 = arith.constant 0 : index
    %c0_43 = arith.constant 0 : index
    %33 = vector.load %arg3[%c0_42, %c0_43] : memref<384x128xbf16, #tpu.memory_space<vmem>>, vector<384x128xbf16>
    %cst_44 = arith.constant dense<0.000000e+00> : vector<32x128xf32>
    %34 = tpu.matmul %32, %33, %cst_44 {dimension_numbers = #tpu.dot_dimension_numbers<[1], [0], [0], [1], [0, 0, 1, 1], [], []>} : vector<32x384xbf16>, vector<384x128xbf16>, vector<32x128xf32> -> vector<32x128xf32>
    %c0_45 = arith.constant 0 : index
    %c0_46 = arith.constant 0 : index
    %35 = vector.load %arg4[%c0_45, %c0_46] : memref<1x128xf32, #tpu.memory_space<vmem>>, vector<1x128xf32>
    %36 = vector.broadcast %35 : vector<1x128xf32> to vector<32x128xf32>
    %37 = arith.addf %34, %36 : vector<32x128xf32>
    %cst_47 = arith.constant 0.000000e+00 : f32
    %38 = vector.broadcast %cst_47 : f32 to vector<32x128xf32>
    %39 = arith.maximumf %37, %38 : vector<32x128xf32>
    %40 = vector.shape_cast %39 : vector<32x128xf32> to vector<2x16x128xf32>
    %41 = vector.extract_strided_slice %20 {offsets = [0, 0, 0], sizes = [2, 1, 128], strides = [1, 1, 1]} : vector<2x16x128xf32> to vector<2x1x128xf32>
    %42 = vector.shape_cast %41 : vector<2x1x128xf32> to vector<2x128xf32>
    %c0_48 = arith.constant 0 : index
    %c0_49 = arith.constant 0 : index
    %43 = vector.load %arg10[%c0_48, %c0_49] : memref<2x4096xf32, #tpu.memory_space<vmem>>, vector<2x128xf32>
    tpu.vector_store %arg10[%c0_48, %c0_49], %42 {strides = array<i32>} : memref<2x4096xf32, #tpu.memory_space<vmem>>, vector<2x128xf32>,
    %44 = vector.extract_strided_slice %40 {offsets = [0, 0, 0], sizes = [2, 1, 128], strides = [1, 1, 1]} : vector<2x16x128xf32> to vector<2x1x128xf32>
    %45 = vector.shape_cast %44 : vector<2x1x128xf32> to vector<2x128xf32>
    %c0_50 = arith.constant 0 : index
    %c128 = arith.constant 128 : index
    %46 = vector.load %arg10[%c0_50, %c128] : memref<2x4096xf32, #tpu.memory_space<vmem>>, vector<2x128xf32>
    tpu.vector_store %arg10[%c0_50, %c128], %45 {strides = array<i32>} : memref<2x4096xf32, #tpu.memory_space<vmem>>, vector<2x128xf32>,
    %47 = vector.extract_strided_slice %20 {offsets = [0, 1, 0], sizes = [2, 1, 128], strides = [1, 1, 1]} : vector<2x16x128xf32> to vector<2x1x128xf32>
    %48 = vector.shape_cast %47 : vector<2x1x128xf32> to vector<2x128xf32>
    %c0_51 = arith.constant 0 : index
    %c256 = arith.constant 256 : index
    %49 = vector.load %arg10[%c0_51, %c256] : memref<2x4096xf32, #tpu.memory_space<vmem>>, vector<2x128xf32>
    tpu.vector_store %arg10[%c0_51, %c256], %48 {strides = array<i32>} : memref<2x4096xf32, #tpu.memory_space<vmem>>, vector<2x128xf32>,
    %50 = vector.extract_strided_slice %40 {offsets = [0, 1, 0], sizes = [2, 1, 128], strides = [1, 1, 1]} : vector<2x16x128xf32> to vector<2x1x128xf32>
    %51 = vector.shape_cast %50 : vector<2x1x128xf32> to vector<2x128xf32>
    %c0_52 = arith.constant 0 : index
    %c384 = arith.constant 384 : index
    %52 = vector.load %arg10[%c0_52, %c384] : memref<2x4096xf32, #tpu.memory_space<vmem>>, vector<2x128xf32>
    tpu.vector_store %arg10[%c0_52, %c384], %51 {strides = array<i32>} : memref<2x4096xf32, #tpu.memory_space<vmem>>, vector<2x128xf32>,
    %53 = vector.extract_strided_slice %20 {offsets = [0, 2, 0], sizes = [2, 1, 128], strides = [1, 1, 1]} : vector<2x16x128xf32> to vector<2x1x128xf32>
    %54 = vector.shape_cast %53 : vector<2x1x128xf32> to vector<2x128xf32>
    %c0_53 = arith.constant 0 : index
    %c512 = arith.constant 512 : index
    %55 = vector.load %arg10[%c0_53, %c512] : memref<2x4096xf32, #tpu.memory_space<vmem>>, vector<2x128xf32>
    tpu.vector_store %arg10[%c0_53, %c512], %54 {strides = array<i32>} : memref<2x4096xf32, #tpu.memory_space<vmem>>, vector<2x128xf32>,
    %56 = vector.extract_strided_slice %40 {offsets = [0, 2, 0], sizes = [2, 1, 128], strides = [1, 1, 1]} : vector<2x16x128xf32> to vector<2x1x128xf32>
    %57 = vector.shape_cast %56 : vector<2x1x128xf32> to vector<2x128xf32>
    %c0_54 = arith.constant 0 : index
    %c640 = arith.constant 640 : index
    %58 = vector.load %arg10[%c0_54, %c640] : memref<2x4096xf32, #tpu.memory_space<vmem>>, vector<2x128xf32>
    tpu.vector_store %arg10[%c0_54, %c640], %57 {strides = array<i32>} : memref<2x4096xf32, #tpu.memory_space<vmem>>, vector<2x128xf32>,
    %59 = vector.extract_strided_slice %20 {offsets = [0, 3, 0], sizes = [2, 1, 128], strides = [1, 1, 1]} : vector<2x16x128xf32> to vector<2x1x128xf32>
    %60 = vector.shape_cast %59 : vector<2x1x128xf32> to vector<2x128xf32>
    %c0_55 = arith.constant 0 : index
    %c768 = arith.constant 768 : index
    %61 = vector.load %arg10[%c0_55, %c768] : memref<2x4096xf32, #tpu.memory_space<vmem>>, vector<2x128xf32>
    tpu.vector_store %arg10[%c0_55, %c768], %60 {strides = array<i32>} : memref<2x4096xf32, #tpu.memory_space<vmem>>, vector<2x128xf32>,
    %62 = vector.extract_strided_slice %40 {offsets = [0, 3, 0], sizes = [2, 1, 128], strides = [1, 1, 1]} : vector<2x16x128xf32> to vector<2x1x128xf32>
    %63 = vector.shape_cast %62 : vector<2x1x128xf32> to vector<2x128xf32>
    %c0_56 = arith.constant 0 : index
    %c896 = arith.constant 896 : index
    %64 = vector.load %arg10[%c0_56, %c896] : memref<2x4096xf32, #tpu.memory_space<vmem>>, vector<2x128xf32>
    tpu.vector_store %arg10[%c0_56, %c896], %63 {strides = array<i32>} : memref<2x4096xf32, #tpu.memory_space<vmem>>, vector<2x128xf32>,
    %65 = vector.extract_strided_slice %20 {offsets = [0, 4, 0], sizes = [2, 1, 128], strides = [1, 1, 1]} : vector<2x16x128xf32> to vector<2x1x128xf32>
    %66 = vector.shape_cast %65 : vector<2x1x128xf32> to vector<2x128xf32>
    %c0_57 = arith.constant 0 : index
    %c1024 = arith.constant 1024 : index
    %67 = vector.load %arg10[%c0_57, %c1024] : memref<2x4096xf32, #tpu.memory_space<vmem>>, vector<2x128xf32>
    tpu.vector_store %arg10[%c0_57, %c1024], %66 {strides = array<i32>} : memref<2x4096xf32, #tpu.memory_space<vmem>>, vector<2x128xf32>,
    %68 = vector.extract_strided_slice %40 {offsets = [0, 4, 0], sizes = [2, 1, 128], strides = [1, 1, 1]} : vector<2x16x128xf32> to vector<2x1x128xf32>
    %69 = vector.shape_cast %68 : vector<2x1x128xf32> to vector<2x128xf32>
    %c0_58 = arith.constant 0 : index
    %c1152 = arith.constant 1152 : index
    %70 = vector.load %arg10[%c0_58, %c1152] : memref<2x4096xf32, #tpu.memory_space<vmem>>, vector<2x128xf32>
    tpu.vector_store %arg10[%c0_58, %c1152], %69 {strides = array<i32>} : memref<2x4096xf32, #tpu.memory_space<vmem>>, vector<2x128xf32>,
    %71 = vector.extract_strided_slice %20 {offsets = [0, 5, 0], sizes = [2, 1, 128], strides = [1, 1, 1]} : vector<2x16x128xf32> to vector<2x1x128xf32>
    %72 = vector.shape_cast %71 : vector<2x1x128xf32> to vector<2x128xf32>
    %c0_59 = arith.constant 0 : index
    %c1280 = arith.constant 1280 : index
    %73 = vector.load %arg10[%c0_59, %c1280] : memref<2x4096xf32, #tpu.memory_space<vmem>>, vector<2x128xf32>
    tpu.vector_store %arg10[%c0_59, %c1280], %72 {strides = array<i32>} : memref<2x4096xf32, #tpu.memory_space<vmem>>, vector<2x128xf32>,
    %74 = vector.extract_strided_slice %40 {offsets = [0, 5, 0], sizes = [2, 1, 128], strides = [1, 1, 1]} : vector<2x16x128xf32> to vector<2x1x128xf32>
    %75 = vector.shape_cast %74 : vector<2x1x128xf32> to vector<2x128xf32>
    %c0_60 = arith.constant 0 : index
    %c1408 = arith.constant 1408 : index
    %76 = vector.load %arg10[%c0_60, %c1408] : memref<2x4096xf32, #tpu.memory_space<vmem>>, vector<2x128xf32>
    tpu.vector_store %arg10[%c0_60, %c1408], %75 {strides = array<i32>} : memref<2x4096xf32, #tpu.memory_space<vmem>>, vector<2x128xf32>,
    %77 = vector.extract_strided_slice %20 {offsets = [0, 6, 0], sizes = [2, 1, 128], strides = [1, 1, 1]} : vector<2x16x128xf32> to vector<2x1x128xf32>
    %78 = vector.shape_cast %77 : vector<2x1x128xf32> to vector<2x128xf32>
    %c0_61 = arith.constant 0 : index
    %c1536 = arith.constant 1536 : index
    %79 = vector.load %arg10[%c0_61, %c1536] : memref<2x4096xf32, #tpu.memory_space<vmem>>, vector<2x128xf32>
    tpu.vector_store %arg10[%c0_61, %c1536], %78 {strides = array<i32>} : memref<2x4096xf32, #tpu.memory_space<vmem>>, vector<2x128xf32>,
    %80 = vector.extract_strided_slice %40 {offsets = [0, 6, 0], sizes = [2, 1, 128], strides = [1, 1, 1]} : vector<2x16x128xf32> to vector<2x1x128xf32>
    %81 = vector.shape_cast %80 : vector<2x1x128xf32> to vector<2x128xf32>
    %c0_62 = arith.constant 0 : index
    %c1664 = arith.constant 1664 : index
    %82 = vector.load %arg10[%c0_62, %c1664] : memref<2x4096xf32, #tpu.memory_space<vmem>>, vector<2x128xf32>
    tpu.vector_store %arg10[%c0_62, %c1664], %81 {strides = array<i32>} : memref<2x4096xf32, #tpu.memory_space<vmem>>, vector<2x128xf32>,
    %83 = vector.extract_strided_slice %20 {offsets = [0, 7, 0], sizes = [2, 1, 128], strides = [1, 1, 1]} : vector<2x16x128xf32> to vector<2x1x128xf32>
    %84 = vector.shape_cast %83 : vector<2x1x128xf32> to vector<2x128xf32>
    %c0_63 = arith.constant 0 : index
    %c1792 = arith.constant 1792 : index
    %85 = vector.load %arg10[%c0_63, %c1792] : memref<2x4096xf32, #tpu.memory_space<vmem>>, vector<2x128xf32>
    tpu.vector_store %arg10[%c0_63, %c1792], %84 {strides = array<i32>} : memref<2x4096xf32, #tpu.memory_space<vmem>>, vector<2x128xf32>,
    %86 = vector.extract_strided_slice %40 {offsets = [0, 7, 0], sizes = [2, 1, 128], strides = [1, 1, 1]} : vector<2x16x128xf32> to vector<2x1x128xf32>
    %87 = vector.shape_cast %86 : vector<2x1x128xf32> to vector<2x128xf32>
    %c0_64 = arith.constant 0 : index
    %c1920 = arith.constant 1920 : index
    %88 = vector.load %arg10[%c0_64, %c1920] : memref<2x4096xf32, #tpu.memory_space<vmem>>, vector<2x128xf32>
    tpu.vector_store %arg10[%c0_64, %c1920], %87 {strides = array<i32>} : memref<2x4096xf32, #tpu.memory_space<vmem>>, vector<2x128xf32>,
    %89 = vector.extract_strided_slice %20 {offsets = [0, 8, 0], sizes = [2, 1, 128], strides = [1, 1, 1]} : vector<2x16x128xf32> to vector<2x1x128xf32>
    %90 = vector.shape_cast %89 : vector<2x1x128xf32> to vector<2x128xf32>
    %c0_65 = arith.constant 0 : index
    %c2048 = arith.constant 2048 : index
    %91 = vector.load %arg10[%c0_65, %c2048] : memref<2x4096xf32, #tpu.memory_space<vmem>>, vector<2x128xf32>
    tpu.vector_store %arg10[%c0_65, %c2048], %90 {strides = array<i32>} : memref<2x4096xf32, #tpu.memory_space<vmem>>, vector<2x128xf32>,
    %92 = vector.extract_strided_slice %40 {offsets = [0, 8, 0], sizes = [2, 1, 128], strides = [1, 1, 1]} : vector<2x16x128xf32> to vector<2x1x128xf32>
    %93 = vector.shape_cast %92 : vector<2x1x128xf32> to vector<2x128xf32>
    %c0_66 = arith.constant 0 : index
    %c2176 = arith.constant 2176 : index
    %94 = vector.load %arg10[%c0_66, %c2176] : memref<2x4096xf32, #tpu.memory_space<vmem>>, vector<2x128xf32>
    tpu.vector_store %arg10[%c0_66, %c2176], %93 {strides = array<i32>} : memref<2x4096xf32, #tpu.memory_space<vmem>>, vector<2x128xf32>,
    %95 = vector.extract_strided_slice %20 {offsets = [0, 9, 0], sizes = [2, 1, 128], strides = [1, 1, 1]} : vector<2x16x128xf32> to vector<2x1x128xf32>
    %96 = vector.shape_cast %95 : vector<2x1x128xf32> to vector<2x128xf32>
    %c0_67 = arith.constant 0 : index
    %c2304 = arith.constant 2304 : index
    %97 = vector.load %arg10[%c0_67, %c2304] : memref<2x4096xf32, #tpu.memory_space<vmem>>, vector<2x128xf32>
    tpu.vector_store %arg10[%c0_67, %c2304], %96 {strides = array<i32>} : memref<2x4096xf32, #tpu.memory_space<vmem>>, vector<2x128xf32>,
    %98 = vector.extract_strided_slice %40 {offsets = [0, 9, 0], sizes = [2, 1, 128], strides = [1, 1, 1]} : vector<2x16x128xf32> to vector<2x1x128xf32>
    %99 = vector.shape_cast %98 : vector<2x1x128xf32> to vector<2x128xf32>
    %c0_68 = arith.constant 0 : index
    %c2432 = arith.constant 2432 : index
    %100 = vector.load %arg10[%c0_68, %c2432] : memref<2x4096xf32, #tpu.memory_space<vmem>>, vector<2x128xf32>
    tpu.vector_store %arg10[%c0_68, %c2432], %99 {strides = array<i32>} : memref<2x4096xf32, #tpu.memory_space<vmem>>, vector<2x128xf32>,
    %101 = vector.extract_strided_slice %20 {offsets = [0, 10, 0], sizes = [2, 1, 128], strides = [1, 1, 1]} : vector<2x16x128xf32> to vector<2x1x128xf32>
    %102 = vector.shape_cast %101 : vector<2x1x128xf32> to vector<2x128xf32>
    %c0_69 = arith.constant 0 : index
    %c2560 = arith.constant 2560 : index
    %103 = vector.load %arg10[%c0_69, %c2560] : memref<2x4096xf32, #tpu.memory_space<vmem>>, vector<2x128xf32>
    tpu.vector_store %arg10[%c0_69, %c2560], %102 {strides = array<i32>} : memref<2x4096xf32, #tpu.memory_space<vmem>>, vector<2x128xf32>,
    %104 = vector.extract_strided_slice %40 {offsets = [0, 10, 0], sizes = [2, 1, 128], strides = [1, 1, 1]} : vector<2x16x128xf32> to vector<2x1x128xf32>
    %105 = vector.shape_cast %104 : vector<2x1x128xf32> to vector<2x128xf32>
    %c0_70 = arith.constant 0 : index
    %c2688 = arith.constant 2688 : index
    %106 = vector.load %arg10[%c0_70, %c2688] : memref<2x4096xf32, #tpu.memory_space<vmem>>, vector<2x128xf32>
    tpu.vector_store %arg10[%c0_70, %c2688], %105 {strides = array<i32>} : memref<2x4096xf32, #tpu.memory_space<vmem>>, vector<2x128xf32>,
    %107 = vector.extract_strided_slice %20 {offsets = [0, 11, 0], sizes = [2, 1, 128], strides = [1, 1, 1]} : vector<2x16x128xf32> to vector<2x1x128xf32>
    %108 = vector.shape_cast %107 : vector<2x1x128xf32> to vector<2x128xf32>
    %c0_71 = arith.constant 0 : index
    %c2816 = arith.constant 2816 : index
    %109 = vector.load %arg10[%c0_71, %c2816] : memref<2x4096xf32, #tpu.memory_space<vmem>>, vector<2x128xf32>
    tpu.vector_store %arg10[%c0_71, %c2816], %108 {strides = array<i32>} : memref<2x4096xf32, #tpu.memory_space<vmem>>, vector<2x128xf32>,
    %110 = vector.extract_strided_slice %40 {offsets = [0, 11, 0], sizes = [2, 1, 128], strides = [1, 1, 1]} : vector<2x16x128xf32> to vector<2x1x128xf32>
    %111 = vector.shape_cast %110 : vector<2x1x128xf32> to vector<2x128xf32>
    %c0_72 = arith.constant 0 : index
    %c2944 = arith.constant 2944 : index
    %112 = vector.load %arg10[%c0_72, %c2944] : memref<2x4096xf32, #tpu.memory_space<vmem>>, vector<2x128xf32>
    tpu.vector_store %arg10[%c0_72, %c2944], %111 {strides = array<i32>} : memref<2x4096xf32, #tpu.memory_space<vmem>>, vector<2x128xf32>,
    %113 = vector.extract_strided_slice %20 {offsets = [0, 12, 0], sizes = [2, 1, 128], strides = [1, 1, 1]} : vector<2x16x128xf32> to vector<2x1x128xf32>
    %114 = vector.shape_cast %113 : vector<2x1x128xf32> to vector<2x128xf32>
    %c0_73 = arith.constant 0 : index
    %c3072 = arith.constant 3072 : index
    %115 = vector.load %arg10[%c0_73, %c3072] : memref<2x4096xf32, #tpu.memory_space<vmem>>, vector<2x128xf32>
    tpu.vector_store %arg10[%c0_73, %c3072], %114 {strides = array<i32>} : memref<2x4096xf32, #tpu.memory_space<vmem>>, vector<2x128xf32>,
    %116 = vector.extract_strided_slice %40 {offsets = [0, 12, 0], sizes = [2, 1, 128], strides = [1, 1, 1]} : vector<2x16x128xf32> to vector<2x1x128xf32>
    %117 = vector.shape_cast %116 : vector<2x1x128xf32> to vector<2x128xf32>
    %c0_74 = arith.constant 0 : index
    %c3200 = arith.constant 3200 : index
    %118 = vector.load %arg10[%c0_74, %c3200] : memref<2x4096xf32, #tpu.memory_space<vmem>>, vector<2x128xf32>
    tpu.vector_store %arg10[%c0_74, %c3200], %117 {strides = array<i32>} : memref<2x4096xf32, #tpu.memory_space<vmem>>, vector<2x128xf32>,
    %119 = vector.extract_strided_slice %20 {offsets = [0, 13, 0], sizes = [2, 1, 128], strides = [1, 1, 1]} : vector<2x16x128xf32> to vector<2x1x128xf32>
    %120 = vector.shape_cast %119 : vector<2x1x128xf32> to vector<2x128xf32>
    %c0_75 = arith.constant 0 : index
    %c3328 = arith.constant 3328 : index
    %121 = vector.load %arg10[%c0_75, %c3328] : memref<2x4096xf32, #tpu.memory_space<vmem>>, vector<2x128xf32>
    tpu.vector_store %arg10[%c0_75, %c3328], %120 {strides = array<i32>} : memref<2x4096xf32, #tpu.memory_space<vmem>>, vector<2x128xf32>,
    %122 = vector.extract_strided_slice %40 {offsets = [0, 13, 0], sizes = [2, 1, 128], strides = [1, 1, 1]} : vector<2x16x128xf32> to vector<2x1x128xf32>
    %123 = vector.shape_cast %122 : vector<2x1x128xf32> to vector<2x128xf32>
    %c0_76 = arith.constant 0 : index
    %c3456 = arith.constant 3456 : index
    %124 = vector.load %arg10[%c0_76, %c3456] : memref<2x4096xf32, #tpu.memory_space<vmem>>, vector<2x128xf32>
    tpu.vector_store %arg10[%c0_76, %c3456], %123 {strides = array<i32>} : memref<2x4096xf32, #tpu.memory_space<vmem>>, vector<2x128xf32>,
    %125 = vector.extract_strided_slice %20 {offsets = [0, 14, 0], sizes = [2, 1, 128], strides = [1, 1, 1]} : vector<2x16x128xf32> to vector<2x1x128xf32>
    %126 = vector.shape_cast %125 : vector<2x1x128xf32> to vector<2x128xf32>
    %c0_77 = arith.constant 0 : index
    %c3584 = arith.constant 3584 : index
    %127 = vector.load %arg10[%c0_77, %c3584] : memref<2x4096xf32, #tpu.memory_space<vmem>>, vector<2x128xf32>
    tpu.vector_store %arg10[%c0_77, %c3584], %126 {strides = array<i32>} : memref<2x4096xf32, #tpu.memory_space<vmem>>, vector<2x128xf32>,
    %128 = vector.extract_strided_slice %40 {offsets = [0, 14, 0], sizes = [2, 1, 128], strides = [1, 1, 1]} : vector<2x16x128xf32> to vector<2x1x128xf32>
    %129 = vector.shape_cast %128 : vector<2x1x128xf32> to vector<2x128xf32>
    %c0_78 = arith.constant 0 : index
    %c3712 = arith.constant 3712 : index
    %130 = vector.load %arg10[%c0_78, %c3712] : memref<2x4096xf32, #tpu.memory_space<vmem>>, vector<2x128xf32>
    tpu.vector_store %arg10[%c0_78, %c3712], %129 {strides = array<i32>} : memref<2x4096xf32, #tpu.memory_space<vmem>>, vector<2x128xf32>,
    %131 = vector.extract_strided_slice %20 {offsets = [0, 15, 0], sizes = [2, 1, 128], strides = [1, 1, 1]} : vector<2x16x128xf32> to vector<2x1x128xf32>
    %132 = vector.shape_cast %131 : vector<2x1x128xf32> to vector<2x128xf32>
    %c0_79 = arith.constant 0 : index
    %c3840 = arith.constant 3840 : index
    %133 = vector.load %arg10[%c0_79, %c3840] : memref<2x4096xf32, #tpu.memory_space<vmem>>, vector<2x128xf32>
    tpu.vector_store %arg10[%c0_79, %c3840], %132 {strides = array<i32>} : memref<2x4096xf32, #tpu.memory_space<vmem>>, vector<2x128xf32>,
    %134 = vector.extract_strided_slice %40 {offsets = [0, 15, 0], sizes = [2, 1, 128], strides = [1, 1, 1]} : vector<2x16x128xf32> to vector<2x1x128xf32>
    %135 = vector.shape_cast %134 : vector<2x1x128xf32> to vector<2x128xf32>
    %c0_80 = arith.constant 0 : index
    %c3968 = arith.constant 3968 : index
    %136 = vector.load %arg10[%c0_80, %c3968] : memref<2x4096xf32, #tpu.memory_space<vmem>>, vector<2x128xf32>
    tpu.vector_store %arg10[%c0_80, %c3968], %135 {strides = array<i32>} : memref<2x4096xf32, #tpu.memory_space<vmem>>, vector<2x128xf32>,
    %c0_81 = arith.constant 0 : index
    %c0_82 = arith.constant 0 : index
    %137 = vector.load %arg10[%c0_81, %c0_82] : memref<2x4096xf32, #tpu.memory_space<vmem>>, vector<2x4096xf32>
    %138 = arith.truncf %137 : vector<2x4096xf32> to vector<2x4096xbf16>
    %c0_83 = arith.constant 0 : index
    %c0_84 = arith.constant 0 : index
    %139 = vector.load %arg5[%c0_83, %c0_84] : memref<4096x16xbf16, #tpu.memory_space<vmem>>, vector<4096x16xbf16>
    %cst_85 = arith.constant dense<0.000000e+00> : vector<2x16xf32>
    %140 = tpu.matmul %138, %139, %cst_85 {dimension_numbers = #tpu.dot_dimension_numbers<[1], [0], [0], [1], [0, 0, 1, 1], [], []>} : vector<2x4096xbf16>, vector<4096x16xbf16>, vector<2x16xf32> -> vector<2x16xf32>
    %c0_86 = arith.constant 0 : index
    %c0_87 = arith.constant 0 : index
    %141 = vector.load %arg6[%c0_86, %c0_87] : memref<1x16xf32, #tpu.memory_space<vmem>>, vector<1x16xf32>
    %142 = vector.broadcast %141 : vector<1x16xf32> to vector<2x16xf32>
    %143 = arith.addf %140, %142 : vector<2x16xf32>
    %c0_88 = arith.constant 0 : index
    %c0_89 = arith.constant 0 : index
    %144 = vector.load %arg7[%c0_88, %c0_89] : memref<2x16xf32, #tpu.memory_space<vmem>>, vector<2x16xf32>
    tpu.vector_store %arg7[%c0_88, %c0_89], %143 {strides = array<i32>} : memref<2x16xf32, #tpu.memory_space<vmem>>, vector<2x16xf32>,
    return
  }
}

</mosaic_0001>

<bundles_post_ra>
// kernel: residual_model_forward.1
= control target key start
LH: loop header
LB: loop body
LE: loop exit
PB: predicated region body
PF: predicated region fallthrough
CT: control target
= control target key end

     0   :  { %vm37_vm0 = vcmask 523264   ;;  %v4978_v4 = vmov 0   ;;  %vm28_vm1 = vcmask 516096   ;;  %v4979_v6 = vmov 0.0   ;;  %s4980_s14 = smov 64   ;;  %s6314_s0 = inlined_call_operand.vmem [shape: f32[2,16,64], index: 0, kind: input, shape index: {}]   ;;  %s6315_s1 = inlined_call_operand.vmem [shape: bf16[192,128], index: 1, kind: input, shape index: {}]   ;;  %s6316_s2 = inlined_call_operand.vmem [shape: f32[1,128], index: 2, kind: input, shape index: {}]   ;;  %s6317_s3 = inlined_call_operand.vmem [shape: bf16[384,128], index: 3, kind: input, shape index: {}]   ;;  %s6318_s4 = inlined_call_operand.vmem [shape: f32[1,128], index: 4, kind: input, shape index: {}]   ;;  %s6319_s5 = inlined_call_operand.vmem [shape: bf16[4096,16], index: 5, kind: input, shape index: {}]   ;;  %s6320_s6 = inlined_call_operand.vmem [shape: f32[1,16], index: 6, kind: input, shape index: {}]   ;;  %s6321_s7 = inlined_call_operand.hbm [shape: f32[2,16], index: 7, kind: output, shape index: {}]  }
   0x1   :  { %v33_v0 = vld [vmem:[%s6314_s0] sm:$0xff]  ;;  %v34_v1 = vld [vmem:[%s6314_s0 + $0x8] sm:$0xff]  ;;  %v35_v2 = vld [vmem:[%s6314_s0 + $0x10] sm:$0xff]  ;;  %187 = vmatprep.subr.bf16.mxu0 %v4978_v4  ;;  %31 = vst.msk [vmem:[#allocation2 + $0x11] sm:$0x1] %vm28_vm1, %v4979_v6 }
   0x2   :  { %38 = vst.msk [vmem:[#allocation2 + $0x1] sm:$0xff] %vm37_vm0, %v33_v0  ;;  %39 = vst.msk [vmem:[#allocation2 + $0x9] sm:$0xff] %vm37_vm0, %v34_v1  ;;  %v36_v3 = vld [vmem:[%s6314_s0 + $0x18] sm:$0xff]  ;;  %v4654_v5 = vld [vmem:[%s6315_s1] sm:$0xff]  }
   0x3   :  { %40 = vst.msk [vmem:[#allocation2 + $0x19] sm:$0xff] %vm37_vm0, %v35_v2  ;;  %41 = vst.msk [vmem:[#allocation2 + $0x21] sm:$0xff] %vm37_vm0, %v36_v3  ;;  %188 = vmatpush1.bf16.msra.mxu0 %v4654_v5  ;;  %v4655_v7 = vld [vmem:[%s6315_s1 + $0x8] sm:$0xff]   ;;  %v4656_v8 = vld [vmem:[%s6315_s1 + $0x10] sm:$0xff]  }
   0x4   :  { %29 = vst.msk [vmem:[#allocation2] sm:$0x1] %vm28_vm1, %v4979_v6  ;;  %30 = vst.msk [vmem:[#allocation2 + $0x18] sm:$0x1] %vm28_vm1, %v4979_v6  ;;  %189 = vmatprep.subr.bf16.mxu0 %v4978_v4  ;;  %v4657_v15 = vld [vmem:[%s6315_s1 + $0x18] sm:$0xff]   ;;  %v4658_v18 = vld [vmem:[%s6315_s1 + $0x20] sm:$0xff]  }
   0x5   :  { %32 = vst.msk [vmem:[#allocation2 + $0x29] sm:$0x1] %vm28_vm1, %v4979_v6  ;;  %240 = vst [vmem:[#allocation3] sm:$0x1] %v4979_v6  ;;  %v4659_v20 = vld [vmem:[%s6315_s1 + $0x28] sm:$0xff]   ;;  %v4666_v21 = vld [vmem:[%s6317_s3 + $0x40] sm:$0xff]  }
   0x6   :  { %241 = vst [vmem:[#allocation3 + $0x18] sm:$0x1] %v4979_v6  ;;  %242 = vst [vmem:[#allocation3 + $0x11] sm:$0x1] %v4979_v6  ;;  %v4667_v22 = vld [vmem:[%s6317_s3] sm:$0xff]   ;;  %4229 = vmatprep.subr.bf16.mxu1 %v4666_v21  ;;  %v4668_v23 = vld [vmem:[%s6317_s3 + $0x48] sm:$0xff]  }
   0x7   :  { %243 = vst [vmem:[#allocation3 + $0x29] sm:$0x1] %v4979_v6  ;;  %190 = vmatpush1.bf16.msra.mxu0 %v4655_v7  ;;  %4230 = vmatpush3.bf16.msra.mxu1 %v4667_v22  ;;  %v4669_v24 = vld [vmem:[%s6317_s3 + $0x8] sm:$0xff]   ;;  %v4670_v25 = vld [vmem:[%s6317_s3 + $0x50] sm:$0xff]   ;;  %v4672_v28 = vld [vmem:[%s6317_s3 + $0x58] sm:$0xff]  }
   0x8   :  { %191 = vmatprep.subr.bf16.mxu0 %v4978_v4  ;;  %4231 = vmatprep.subr.bf16.mxu1 %v4668_v23  ;;  %v4660_v26 = vld [vmem:[%s6315_s1 + $0x30] sm:$0xff]   ;;  %v4661_v29 = vld [vmem:[%s6315_s1 + $0x38] sm:$0xff]   ;;  %v4662_v31 = vld [vmem:[%s6315_s1 + $0x40] sm:$0xff]  }
   0x9   :  { %v46_v9 = vld [vmem:[#allocation2 + $0x1] sm:$0xff]  ;;  %v47_v10 = vld [vmem:[#allocation2 + $0x9] sm:$0xff]  ;;  %v4673_v30 = vld [vmem:[%s6317_s3 + $0x18] sm:$0xff]  }
   0xa   :  { %v48_v11 = vld [vmem:[#allocation2 + $0x19] sm:$0xff]  ;;  %v4644_v12 = vpack.i.bf16 %v47_v10, %v46_v9  ;;  %v49_v13 = vld [vmem:[#allocation2 + $0x21] sm:$0xff]  ;;  %v51_v17 = vld [vmem:[#allocation2 + $0xa] sm:$0xff] }
   0xb   :  { %v4649_v14 = vpack.i.bf16 %v49_v13, %v48_v11  ;;  %192 = vmatpush1.bf16.msra.mxu0 %v4656_v8  ;;  %v50_v16 = vld [vmem:[#allocation2 + $0x2] sm:$0xff]  ;;  %4232 = vmatpush3.bf16.msra.mxu1 %v4669_v24  ;;  %v4671_v27 = vld [vmem:[%s6317_s3 + $0x10] sm:$0xff]   ;;  %v4665_v34 = vld [vmem:[%s6315_s1 + $0x58] sm:$0xff]  }
   0xc   :  { %4645 = vrot.lane.b32.xlu0 %v4644_v12, %s4980_s14  ;;  %193 = vmatprep.subr.bf16.mxu0 %v4978_v4  ;;  %v75_v19 = vpack.c.bf16 %v51_v17, %v50_v16  ;;  %v4663_v32 = vld [vmem:[%s6315_s1 + $0x48] sm:$0xff]   ;;  %v4664_v33 = vld [vmem:[%s6315_s1 + $0x50] sm:$0xff]   ;;  %v42_v35 = vld [vmem:[#allocation2] sm:$0xff] }
   0xd   :  { %4233 = vmatprep.subr.bf16.mxu1 %v4670_v25  ;;  %v43_v36 = vld [vmem:[#allocation2 + $0x8] sm:$0xff]  ;;  %v52_v37 = vld [vmem:[#allocation2 + $0x1a] sm:$0xff] }
   0xe   :  { %3945 = vmatprep.mubr.msk.bf16.mxu0 %vm37_vm0, %v75_v19  ;;  %v53_v38 = vld [vmem:[#allocation2 + $0x22] sm:$0xff]  ;;  %v44_v42 = vld [vmem:[#allocation2 + $0x18] sm:$0xff] }
   0xf   :  { %194 = vmatpush1.bf16.msra.mxu0 %v4657_v15  ;;  %4234 = vmatpush3.bf16.msra.mxu1 %v4671_v27  ;;  %v45_v43 = vld [vmem:[#allocation2 + $0x20] sm:$0xff]  ;;  %v77_v46 = vpack.c.bf16 %v53_v38, %v52_v37 }
  0x10   :  { %4650 = vrot.lane.b32.xlu0 %v4649_v14, %s4980_s14  ;;  %195 = vmatprep.subr.bf16.mxu0 %v4978_v4 }
  0x11   :  { %4235 = vmatprep.subr.bf16.mxu1 %v4672_v28 }
  0x13   :  { %196 = vmatpush1.bf16.msra.mxu0 %v4658_v18  ;;  %4236 = vmatpush3.bf16.msra.mxu1 %v4673_v30 }
  0x14   :  { %197 = vmatprep.subr.bf16.mxu0 %v4978_v4 }
  0x17   :  { %198 = vmatpush1.bf16.msra.mxu0 %v4659_v20 }
  0x18   :  { %199 = vmatprep.subr.bf16.mxu0 %v4978_v4 }
  0x1b   :  { %200 = vmatpush1.bf16.msra.mxu0 %v4660_v26 }
  0x1c   :  { %201 = vmatprep.subr.bf16.mxu0 %v4978_v4 }
  0x1f   :  { %202 = vmatpush1.bf16.msra.mxu0 %v4661_v29 }
  0x20   :  { %203 = vmatprep.subr.bf16.mxu0 %v4978_v4 }
  0x23   :  { %204 = vmatpush1.bf16.msra.mxu0 %v4662_v31 }
  0x24   :  { %205 = vmatprep.subr.bf16.mxu0 %v4978_v4 }
  0x27   :  { %206 = vmatpush1.bf16.msra.mxu0 %v4663_v32 }
  0x28   :  { %207 = vmatprep.subr.bf16.mxu0 %v4978_v4 }
  0x2b   :  { %208 = vmatpush1.bf16.msra.mxu0 %v4664_v33 }
  0x2c   :  { %209 = vmatprep.subr.bf16.mxu0 %v4978_v4 }
  0x2f   :  { %210 = vmatpush1.bf16.msra.mxu0 %v4665_v34 }
  0x7e   :  { %v4646_v39 = vpop.permute.xlu0 %4645 }
  0x7f   :  { %v4648_v40 = vunpack.i.h.bf16 %v4646_v39  ;;  %v4647_v41 = vunpack.i.l.bf16 %v4646_v39 }
  0x81   :  { %v70_v44 = vsel %vm37_vm0, %v42_v35, %v4647_v41  ;;  %v71_v45 = vsel %vm37_vm0, %v43_v36, %v4648_v40 }
  0x82   :  { %v74_v47 = vpack.c.bf16 %v71_v45, %v70_v44  ;;  %v4651_v48 = vpop.permute.xlu0 %4650 }
  0x83   :  { %v4653_v49 = vunpack.i.h.bf16 %v4651_v48  ;;  %v4652_v50 = vunpack.i.l.bf16 %v4651_v48 }
  0x84   :  { %220 = vmatmul.mubr.bf16.vlgmr.msra.gmra.mrb[0].mxu0 %v74_v47 }
  0x85   :  { %3946 = vmatprep.mubr.msk.bf16.mxu0 %vm37_vm0, %v77_v46  ;;  %v72_v51 = vsel %vm37_vm0, %v44_v42, %v4652_v50  ;;  %v73_v52 = vsel %vm37_vm0, %v45_v43, %v4653_v49 }
  0x86   :  { %v76_v53 = vpack.c.bf16 %v73_v52, %v72_v51 }
  0x8c   :  { %228 = vmatmul.mubr.bf16.gmra.mrb[4].mxu0 %v76_v53 }
  0x8d   :  { %12 = vsyncpa [#allocation6], 0  ;;  %v4674_v54 = vld [vmem:[%s6317_s3 + $0x60] sm:$0xff]   ;;  %v4676_v56 = vld [vmem:[%s6317_s3 + $0x68] sm:$0xff]   ;;  %v4981_v63 = vmov 1983009808   ;;  %v572_v1 = vlaneseq }
  0x8e   :  { %4237 = vmatprep.subr.bf16.mxu1 %v4674_v54  ;;  %v4675_v55 = vld [vmem:[%s6317_s3 + $0x20] sm:$0xff]   ;;  %v4677_v57 = vld [vmem:[%s6317_s3 + $0x28] sm:$0xff]   ;;  %v4678_v58 = vld [vmem:[%s6317_s3 + $0x70] sm:$0xff]   ;;  %v570_v0 = vunpack.c.l.s4 %v4981_v63  ;;  %vm588_vm2 = vcmask 1041409   ;;  %vm590_vm3 = vcmask 1043459   ;;  %vm592_vm4 = vcmask 1045509  }
  0x8f   :  { %4238 = vmatpush3.bf16.msra.mxu1 %v4675_v55  ;;  %v4679_v59 = vld [vmem:[%s6317_s3 + $0x30] sm:$0xff]   ;;  %v4680_v60 = vld [vmem:[%s6317_s3 + $0x78] sm:$0xff]   ;;  %v5144_v62 = vld [vmem:[%s6317_s3 + $0x80] sm:$0xff]   ;;  %v573_v3 = vshrl.u32 %v572_v1, 7  ;;  %vm594_vm5 = vcmask 1047559   ;;  %vm3916_vm6 = vcmask 123904  }
  0x90   :  { %4239 = vmatprep.subr.bf16.mxu1 %v4676_v56  ;;  %v4681_v61 = vld [vmem:[%s6317_s3 + $0x38] sm:$0xff]   ;;  %v571_v2 = vunpack.c.0.s8 %v570_v0  ;;  %v3932_v4 = vld [vmem:[%s6316_s2] ss:$0 sm:$0xff]  ;;  %v4683_v48 = vld [vmem:[%s6317_s3 + $0x88] sm:$0xff]  }
  0x92   :  { %v5150_v7 = vsub.s32 %v571_v2, %v573_v3  ;;  %v4684_v3 = vld [vmem:[%s6317_s3 + $0x90] sm:$0xff]  }
  0x93   :  { %4240 = vmatpush3.bf16.msra.mxu1 %v4677_v57 }
  0x94   :  { %4241 = vmatprep.subr.bf16.mxu1 %v4678_v58 }
  0x97   :  { %4242 = vmatpush3.bf16.msra.mxu1 %v4679_v59 }
  0x98   :  { %4243 = vmatprep.subr.bf16.mxu1 %v4680_v60 }
  0x9b   :  { %4244 = vmatpush3.bf16.msra.mxu1 %v4681_v61 }
  0x9c   :  { %4619 = vmatprep.subr.bf16.mxu1 %v5144_v62 }
 0x157   :  { %v221_v5 = vpop.f32.mrb[0].mxu0 }
 0x158   :  { %v222_v6 = vadd.f32 %v3932_v4, %v221_v5  ;;  %v223_v8 = vpop.f32.mrb[1].mxu0 }
 0x159   :  { %v224_v9 = vpop.f32.mrb[2].mxu0 }
 0x15a   :  { %v236_v10 = vmax.f32 %v222_v6, 0.0  ;;  %v225_v11 = vadd.f32 %v3932_v4, %v224_v9  ;;  %v226_v12 = vpop.f32.mrb[3].mxu0 }
 0x15c   :  { %244 = vst [vmem:[#allocation3 + $0x1] sm:$0xff] %v236_v10  ;;  %v575_v13 = vrot.slane %v236_v10, %v5150_v7  ;;  %v681_v14 = vcombine.high %v236_v10, %v236_v10  ;;  %v237_v15 = vmax.f32 %v225_v11, 0.0 }
 0x15e   :  { %v5154_v16 = vrot.slane %v681_v14, %v5150_v7  ;;  %245 = vst [vmem:[#allocation3 + $0x9] sm:$0xff] %v237_v15  ;;  %v5157_v17 = vrot.slane %v237_v15, %v5150_v7  ;;  %v5159_v18 = vcombine.high %v575_v13, %v575_v13  ;;  %v897_v19 = vcombine.high %v237_v15, %v237_v15 }
 0x15f   :  { %v229_v20 = vpop.f32.mrb[4].mxu0  ;;  %v261_v21 = vpack.c.bf16 %v237_v15, %v236_v10  ;;  %v623_v28 = vrot.slane %v575_v13, 1 }
 0x160   :  { %v5163_v22 = vcombine.high %v5154_v16, %v5154_v16  ;;  %v231_v23 = vpop.f32.mrb[5].mxu0  ;;  %v5167_v24 = vcombine.high %v5157_v17, %v5157_v17  ;;  %v5170_v25 = vrot.slane %v897_v19, %v5150_v7  ;;  %v230_v26 = vadd.f32 %v3932_v4, %v229_v20 }
 0x161   :  { %v232_v27 = vpop.f32.mrb[6].mxu0  ;;  %497 = vmatprep.mubr.bf16.mxu1 %v261_v21  ;;  %v663_v31 = vrot.slane %v5159_v18, 1  ;;  %v731_v32 = vrot.slane %v5154_v16, 1  ;;  %v839_v36 = vrot.slane %v5157_v17, 1  ;;  %v4685_v21 = vld [vmem:[%s6317_s3 + $0x98] sm:$0xff]  }
 0x162   :  { %v233_v29 = vadd.f32 %v3932_v4, %v232_v27  ;;  %v234_v30 = vpop.f32.mrb[7].mxu0  ;;  %v5176_v33 = vcombine.high %v5170_v25, %v5170_v25  ;;  %v238_v34 = vmax.f32 %v230_v26, 0.0  ;;  %v771_v35 = vrot.slane %v5163_v22, 1 }
 0x163   :  { %v879_v37 = vrot.slane %v5167_v24, 1  ;;  %v947_v39 = vrot.slane %v5170_v25, 1  ;;  %v248_v43 = vld [vmem:[#allocation3] sm:$0xff] }
 0x164   :  { %v5181_v38 = vmax.f32 %v233_v29, 0.0  ;;  %v987_v40 = vrot.slane %v5176_v33, 1  ;;  %246 = vst [vmem:[#allocation3 + $0x19] sm:$0xff] %v238_v34  ;;  %v582_v41 = vrot.slane %v238_v34, %v5150_v7  ;;  %v689_v42 = vcombine.high %v238_v34, %v238_v34 }
 0x165   :  { %v249_v44 = vld [vmem:[#allocation3 + $0x8] sm:$0xff] }
 0x166   :  { %247 = vst [vmem:[#allocation3 + $0x21] sm:$0xff] %v5181_v38  ;;  %v5189_v45 = vrot.slane %v5181_v38, %v5150_v7  ;;  %v905_v46 = vcombine.high %v5181_v38, %v5181_v38  ;;  %v260_v47 = vpack.c.bf16 %v249_v44, %v248_v43  ;;  %v264_v49 = vpack.c.bf16 %v5181_v38, %v238_v34 }
 0x167   :  { %v587_v50 = vrot.slane %v582_v41, 7  ;;  %v626_v51 = vsel %vm588_vm2, %v582_v41, %v623_v28  ;;  %v642_v52 = vcombine.high %v582_v41, %v582_v41  ;;  %v696_v53 = vrot.slane %v689_v42, %v5150_v7  ;;  %v256_v28 = vld [vmem:[#allocation3 + $0x2] sm:$0xff] }
 0x168   :  { %v627_v54 = vsel %vm590_vm3, %v582_v41, %v626_v51  ;;  %v807_v55 = vrot.slane %v5189_v45, 7  ;;  %v842_v56 = vsel %vm588_vm2, %v5189_v45, %v839_v36  ;;  %v5205_v57 = vcombine.high %v5189_v45, %v5189_v45  ;;  %498 = vmatmul.mubr.bf16.vlgmr.msra.gmra.mrb[0].mxu1 %v260_v47 }
 0x169   :  { %v589_v58 = vsel %vm588_vm2, %v587_v50, %v575_v13  ;;  %v628_v59 = vsel %vm592_vm4, %v582_v41, %v627_v54  ;;  %v5209_v60 = vrot.slane %v642_v52, 7  ;;  %v666_v61 = vsel %vm588_vm2, %v642_v52, %v663_v31  ;;  %4620 = vmatpush3.bf16.msra.mxu1 %v5144_v62  ;;  %505 = vmatprep.mubr.bf16.mxu1 %v264_v49 }
 0x16a   :  { %v591_v63 = vsel %vm590_vm3, %v587_v50, %v589_v58  ;;  %v629_v0 = vsel %vm594_vm5, %v582_v41, %v628_v59  ;;  %v667_v1 = vsel %vm590_vm3, %v642_v52, %v666_v61  ;;  %v699_v2 = vrot.slane %v696_v53, 7  ;;  %4621 = vmatprep.subr.bf16.mxu1 %v4683_v48  ;;  %v257_v41 = vld [vmem:[#allocation3 + $0xa] sm:$0xff] }
 0x16b   :  { %v593_v4 = vsel %vm592_vm4, %v587_v50, %v591_v63  ;;  %631 = vst [vmem:[#allocation4 + $0x4] sm:$0x3] %v629_v0  ;;  %v646_v62 = vsel %vm588_vm2, %v5209_v60, %v5159_v18  ;;  %v668_v5 = vsel %vm592_vm4, %v642_v52, %v667_v1  ;;  %v734_v6 = vsel %vm588_vm2, %v696_v53, %v731_v32  ;;  %v250_v34 = vld [vmem:[#allocation3 + $0x18] sm:$0xff] }
 0x16c   :  { %v595_v8 = vsel %vm594_vm5, %v587_v50, %v593_v4  ;;  %v647_v9 = vsel %vm590_vm3, %v5209_v60, %v646_v62  ;;  %v669_v10 = vsel %vm594_vm5, %v642_v52, %v668_v5  ;;  %v700_v11 = vsel %vm588_vm2, %v699_v2, %v5154_v16 }
 0x16d   :  { %597 = vst [vmem:[#allocation4] sm:$0x3] %v595_v8  ;;  %671 = vst [vmem:[#allocation4 + $0xc] sm:$0x3] %v669_v10  ;;  %v701_v12 = vsel %vm590_vm3, %v699_v2, %v700_v11  ;;  %v735_v13 = vsel %vm590_vm3, %v696_v53, %v734_v6  ;;  %v750_v14 = vcombine.high %v696_v53, %v696_v53  ;;  %4622 = vmatpush3.bf16.msra.mxu1 %v4683_v48  ;;  %v251_v36 = vld [vmem:[#allocation3 + $0x20] sm:$0xff] }
 0x16e   :  { %v808_v15 = vsel %vm588_vm2, %v807_v55, %v5157_v17  ;;  %v702_v18 = vsel %vm592_vm4, %v699_v2, %v701_v12  ;;  %v736_v19 = vsel %vm592_vm4, %v696_v53, %v735_v13  ;;  %v843_v16 = vsel %vm590_vm3, %v5189_v45, %v842_v56  ;;  %4623 = vmatprep.subr.bf16.mxu1 %v4684_v3  ;;  %v4688_v10 = vld [vmem:[%s6317_s3 + $0xb0] sm:$0xff]   ;;  %v4689_v13 = vld [vmem:[%s6317_s3 + $0xb8] sm:$0xff]  }
 0x16f   :  { %v809_v20 = vsel %vm590_vm3, %v807_v55, %v808_v15  ;;  %v703_v23 = vsel %vm594_vm5, %v699_v2, %v702_v18  ;;  %v737_v26 = vsel %vm594_vm5, %v696_v53, %v736_v19  ;;  %v5245_v17 = vrot.slane %v750_v14, 7  ;;  %v259_v15 = vld [vmem:[#allocation3 + $0x22] sm:$0xff]  ;;  %v4690_v19 = vld [vmem:[%s6319_s5 + $0x40] sm:$0xff]  }
 0x170   :  { %v774_v27 = vsel %vm588_vm2, %v750_v14, %v771_v35  ;;  %705 = vst [vmem:[#allocation4 + $0x10] sm:$0x3] %v703_v23  ;;  %739 = vst [vmem:[#allocation4 + $0x14] sm:$0x3] %v737_v26  ;;  %v810_v30 = vsel %vm592_vm4, %v807_v55, %v809_v20  ;;  %v844_v31 = vsel %vm592_vm4, %v5189_v45, %v843_v16  ;;  %v861_v32 = vrot.slane %v5205_v57, 7  ;;  %v4691_v20 = vld [vmem:[%s6319_s5] sm:$0xff]  }
 0x171   :  { %v775_v29 = vsel %vm590_vm3, %v750_v14, %v774_v27  ;;  %v754_v42 = vsel %vm588_vm2, %v5245_v17, %v5163_v22  ;;  %v811_v43 = vsel %vm594_vm5, %v807_v55, %v810_v30  ;;  %v845_v44 = vsel %vm594_vm5, %v5189_v45, %v844_v31  ;;  %4624 = vmatpush3.bf16.msra.mxu1 %v4684_v3  ;;  %v4692_v16 = vld [vmem:[%s6319_s5 + $0xc0] sm:$0xff]   ;;  %v4694_v23 = vld [vmem:[%s6319_s5 + $0x48] sm:$0xff]   ;;  %v4700_v30 = vld [vmem:[%s6319_s5 + $0xd0] sm:$0xff]  }
 0x172   :  { %v776_v35 = vsel %vm592_vm4, %v750_v14, %v775_v29  ;;  %813 = vst [vmem:[#allocation4 + $0x20] sm:$0x3] %v811_v43  ;;  %847 = vst [vmem:[#allocation4 + $0x24] sm:$0x3] %v845_v44  ;;  %v862_v48 = vsel %vm588_vm2, %v861_v32, %v5167_v24  ;;  %v882_v22 = vsel %vm588_vm2, %v5205_v57, %v879_v37  ;;  %4625 = vmatprep.subr.bf16.mxu1 %v4685_v21  ;;  %v4686_v24 = vld [vmem:[%s6317_s3 + $0xa0] sm:$0xff]   ;;  %v4695_v26 = vld [vmem:[%s6319_s5 + $0x8] sm:$0xff]  }
 0x173   :  { %v777_v47 = vsel %vm594_vm5, %v750_v14, %v776_v35  ;;  %v912_v49 = vrot.slane %v905_v46, %v5150_v7  ;;  %v863_v45 = vsel %vm590_vm3, %v861_v32, %v862_v48  ;;  %v883_v50 = vsel %vm590_vm3, %v5205_v57, %v882_v22  ;;  %v258_v14 = vld [vmem:[#allocation3 + $0x1a] sm:$0xff]  ;;  %4267 = vmatprep.subr.bf16.mxu0 %v4690_v19  ;;  %v4707_v35 = vld [vmem:[%s6319_s5 + $0x20] sm:$0xff]  }
 0x174   :  { %779 = vst [vmem:[#allocation4 + $0x1c] sm:$0x3] %v777_v47  ;;  %v263_v51 = vpack.c.bf16 %v251_v36, %v250_v34  ;;  %v262_v52 = vpack.c.bf16 %v257_v41, %v256_v28  ;;  %v884_v37 = vsel %vm592_vm4, %v5205_v57, %v883_v50  ;;  %v648_v56 = vsel %vm592_vm4, %v5209_v60, %v647_v9  ;;  %v4697_v27 = vld [vmem:[%s6319_s5 + $0x88] sm:$0xff]   ;;  %v4698_v28 = vld [vmem:[%s6319_s5 + $0x50] sm:$0xff]   ;;  %v4703_v34 = vld [vmem:[%s6319_s5 + $0x18] sm:$0xff]  }
 0x175   :  { %v915_v53 = vrot.slane %v912_v49, 7  ;;  %v950_v38 = vsel %vm588_vm2, %v912_v49, %v947_v39  ;;  %v966_v46 = vcombine.high %v912_v49, %v912_v49  ;;  %v885_v54 = vsel %vm594_vm5, %v5205_v57, %v884_v37  ;;  %4626 = vmatpush3.bf16.msra.mxu1 %v4685_v21  ;;  %v4693_v21 = vld [vmem:[%s6319_s5 + $0x80] sm:$0xff]   ;;  %4268 = vmatpush3.bf16.msra.mxu0 %v4691_v20  ;;  %v4699_v29 = vld [vmem:[%s6319_s5 + $0x10] sm:$0xff]   ;;  %v4704_v36 = vld [vmem:[%s6319_s5 + $0xd8] sm:$0xff]  }
 0x176   :  { %v951_v55 = vsel %vm590_vm3, %v912_v49, %v950_v38  ;;  %506 = vmatmul.mubr.bf16.gmra.mrb[4].mxu1 %v263_v51  ;;  %887 = vst [vmem:[#allocation4 + $0x2c] sm:$0x3] %v885_v54  ;;  %4627 = vmatprep.subr.bf16.mxu1 %v4686_v24  ;;  %v649_v1 = vsel %vm594_vm5, %v5209_v60, %v648_v56  ;;  %v4701_v31 = vld [vmem:[%s6319_s5 + $0x90] sm:$0xff]   ;;  %v4705_v41 = vld [vmem:[%s6319_s5 + $0x98] sm:$0xff]   ;;  %v4708_v43 = vld [vmem:[%s6319_s5 + $0xe0] sm:$0xff]  }
 0x177   :  { %v916_v58 = vsel %vm588_vm2, %v915_v53, %v5170_v25  ;;  %v952_v59 = vsel %vm592_vm4, %v912_v49, %v951_v55  ;;  %v969_v61 = vrot.slane %v966_v46, 7  ;;  %v990_v39 = vsel %vm588_vm2, %v966_v46, %v987_v40  ;;  %4635 = vmatprep.mubr.bf16.mxu1 %v262_v52  ;;  %v4687_v25 = vld [vmem:[%s6317_s3 + $0xa8] sm:$0xff]   ;;  %651 = vst [vmem:[#allocation4 + $0x8] sm:$0x3] %v649_v1  ;;  %v4709_v44 = vld [vmem:[%s6319_s5 + $0xa0] sm:$0xff]   ;;  %v4715_v50 = vld [vmem:[%s6319_s5 + $0x30] sm:$0xff]  }
 0x178   :  { %v917_v57 = vsel %vm590_vm3, %v915_v53, %v916_v58  ;;  %v953_v63 = vsel %vm594_vm5, %v912_v49, %v952_v59  ;;  %v991_v0 = vsel %vm590_vm3, %v966_v46, %v990_v39  ;;  %v755_v4 = vsel %vm590_vm3, %v5245_v17, %v754_v42  ;;  %4269 = vmatprep.subr.bf16.mxu0 %v4694_v23  ;;  %v4706_v42 = vld [vmem:[%s6319_s5 + $0x60] sm:$0xff]   ;;  %v4710_v47 = vld [vmem:[%s6319_s5 + $0x68] sm:$0xff]   ;;  %v4716_v51 = vld [vmem:[%s6319_s5 + $0xf0] sm:$0xff]  }
 0x179   :  { %v918_v2 = vsel %vm592_vm4, %v915_v53, %v917_v57  ;;  %955 = vst [vmem:[#allocation4 + $0x34] sm:$0x3] %v953_v63  ;;  %v970_v40 = vsel %vm588_vm2, %v969_v61, %v5176_v33  ;;  %v992_v3 = vsel %vm592_vm4, %v966_v46, %v991_v0  ;;  %v756_v6 = vsel %vm592_vm4, %v5245_v17, %v755_v4  ;;  %v4711_v48 = vld [vmem:[%s6319_s5 + $0x28] sm:$0xff]   ;;  %v4717_v52 = vld [vmem:[%s6319_s5 + $0xb0] sm:$0xff]   ;;  %v4719_v37 = vld [vmem:[%s6319_s5 + $0x38] sm:$0xff]  }
 0x17a   :  { %v919_v62 = vsel %vm594_vm5, %v915_v53, %v918_v2  ;;  %v993_v5 = vsel %vm594_vm5, %v966_v46, %v992_v3  ;;  %v864_v60 = vsel %vm592_vm4, %v861_v32, %v863_v45  ;;  %4628 = vmatpush3.bf16.msra.mxu1 %v4686_v24  ;;  %v757_v33 = vsel %vm594_vm5, %v5245_v17, %v756_v6  ;;  %v4696_v17 = vld [vmem:[%s6319_s5 + $0xc8] sm:$0xff]   ;;  %v4714_v45 = vld [vmem:[%s6319_s5 + $0x70] sm:$0xff]   ;;  %v4718_v24 = vld [vmem:[%s6319_s5 + $0x78] sm:$0xff]  }
 0x17b   :  { %921 = vst [vmem:[#allocation4 + $0x30] sm:$0x3] %v919_v62  ;;  %995 = vst [vmem:[#allocation4 + $0x3c] sm:$0x3] %v993_v5  ;;  %v865_v8 = vsel %vm594_vm5, %v861_v32, %v864_v60  ;;  %v971_v9 = vsel %vm590_vm3, %v969_v61, %v970_v40  ;;  %4629 = vmatprep.subr.bf16.mxu1 %v4687_v25  ;;  %v265_v18 = vpack.c.bf16 %v259_v15, %v258_v14  ;;  %v4702_v32 = vld [vmem:[%s6319_s5 + $0x58] sm:$0xff]   ;;  %v4712_v22 = vld [vmem:[%s6319_s5 + $0xe8] sm:$0xff]  }
 0x17c   :  { %759 = vst [vmem:[#allocation4 + $0x18] sm:$0x3] %v757_v33  ;;  %867 = vst [vmem:[#allocation4 + $0x28] sm:$0x3] %v865_v8  ;;  %v972_v11 = vsel %vm592_vm4, %v969_v61, %v971_v9  ;;  %4270 = vmatpush3.bf16.msra.mxu0 %v4695_v26  ;;  %v4713_v49 = vld [vmem:[%s6319_s5 + $0xa8] sm:$0xff]   ;;  %v4720_v53 = vld [vmem:[%s6319_s5 + $0xf8] sm:$0xff]  }
 0x17d   :  { %v973_v12 = vsel %vm594_vm5, %v969_v61, %v972_v11  ;;  %4271 = vmatprep.subr.bf16.mxu0 %v4698_v28  ;;  %v4722_v38 = vld [vmem:[%s6319_s5 + $0x140] sm:$0xff]   ;;  %v4721_v46 = vld [vmem:[%s6319_s5 + $0xb8] sm:$0xff]  }
 0x17e   :  { %975 = vst [vmem:[#allocation4 + $0x38] sm:$0x3] %v973_v12  ;;  %4630 = vmatpush3.bf16.msra.mxu1 %v4687_v25  ;;  %v4725_v54 = vld [vmem:[%s6319_s5 + $0x1c0] sm:$0xff]  }
 0x17f   :  { %4631 = vmatprep.subr.bf16.mxu1 %v4688_v10  ;;  %v3947_v40 = vld [vmem:[%s6318_s4] ss:$0 sm:$0xff] }
 0x180   :  { %4272 = vmatpush3.bf16.msra.mxu0 %v4699_v29 }
 0x181   :  { %4273 = vmatprep.subr.bf16.mxu0 %v4702_v32 }
 0x182   :  { %4632 = vmatpush3.bf16.msra.mxu1 %v4688_v10 }
 0x183   :  { %4633 = vmatprep.subr.bf16.mxu1 %v4689_v13 }
 0x184   :  { %4274 = vmatpush3.bf16.msra.mxu0 %v4703_v34 }
 0x185   :  { %4275 = vmatprep.subr.bf16.mxu0 %v4706_v42 }
 0x186   :  { %4634 = vmatpush3.bf16.msra.mxu1 %v4689_v13 }
 0x187   :  { %4289 = vmatprep.subr.bf16.mxu1 %v4692_v16 }
 0x188   :  { %4276 = vmatpush3.bf16.msra.mxu0 %v4707_v35 }
 0x189   :  { %4636 = vmatmul.mubr.bf16.vlgmr.msra.gmra.mrb[8].mxu1 %v265_v18  ;;  %4277 = vmatprep.subr.bf16.mxu0 %v4710_v47 }
 0x18a   :  { %4290 = vmatpush3.bf16.msra.mxu1 %v4693_v21 }
 0x18b   :  { %4291 = vmatprep.subr.bf16.mxu1 %v4696_v17 }
 0x18c   :  { %4278 = vmatpush3.bf16.msra.mxu0 %v4711_v48 }
 0x18d   :  { %4279 = vmatprep.subr.bf16.mxu0 %v4714_v45 }
 0x18e   :  { %4292 = vmatpush3.bf16.msra.mxu1 %v4697_v27 }
 0x18f   :  { %4293 = vmatprep.subr.bf16.mxu1 %v4700_v30 }
 0x190   :  { %4280 = vmatpush3.bf16.msra.mxu0 %v4715_v50 }
 0x191   :  { %4281 = vmatprep.subr.bf16.mxu0 %v4718_v24 }
 0x192   :  { %4294 = vmatpush3.bf16.msra.mxu1 %v4701_v31 }
 0x193   :  { %4295 = vmatprep.subr.bf16.mxu1 %v4704_v36 }
 0x194   :  { %4282 = vmatpush3.bf16.msra.mxu0 %v4719_v37 }
 0x195   :  { %4311 = vmatprep.subr.bf16.mxu0 %v4722_v38 }
 0x196   :  { %4296 = vmatpush3.bf16.msra.mxu1 %v4705_v41 }
 0x197   :  { %4297 = vmatprep.subr.bf16.mxu1 %v4708_v43 }
 0x19a   :  { %4298 = vmatpush3.bf16.msra.mxu1 %v4709_v44 }
 0x19b   :  { %4299 = vmatprep.subr.bf16.mxu1 %v4712_v22 }
 0x19e   :  { %4300 = vmatpush3.bf16.msra.mxu1 %v4713_v49 }
 0x19f   :  { %4301 = vmatprep.subr.bf16.mxu1 %v4716_v51 }
 0x1a2   :  { %4302 = vmatpush3.bf16.msra.mxu1 %v4717_v52 }
 0x1a3   :  { %4303 = vmatprep.subr.bf16.mxu1 %v4720_v53 }
 0x1a6   :  { %4304 = vmatpush3.bf16.msra.mxu1 %v4721_v46 }
 0x1a7   :  { %4333 = vmatprep.subr.bf16.mxu1 %v4725_v54 }
 0x23b   :  { %v4245_v55 = vpop.f32.mrb[0].mxu1 }
 0x23c   :  { %v4246_v56 = vpop.f32.mrb[1].mxu1 }
 0x23d   :  { %v4247_v58 = vadd.f32 %v4246_v56, %v4245_v55  ;;  %v4248_v59 = vpop.f32.mrb[2].mxu1 }
 0x23e   :  { %v4249_v61 = vpop.f32.mrb[3].mxu1 }
 0x23f   :  { %v4250_v39 = vadd.f32 %v4249_v61, %v4248_v59  ;;  %v500_v62 = vadd.f32 %v4247_v58, %v3947_v40 }
 0x241   :  { %v503_v9 = vadd.f32 %v4250_v39, %v3947_v40 }
 0x249   :  { %v4251_v57 = vpop.f32.mrb[4].mxu1 }
 0x24a   :  { %v4252_v63 = vpop.f32.mrb[5].mxu1 }
 0x24b   :  { %v4253_v0 = vadd.f32 %v4252_v63, %v4251_v57  ;;  %v4254_v25 = vpop.f32.mrb[6].mxu1 }
 0x24c   :  { %v4255_v1 = vpop.f32.mrb[7].mxu1 }
 0x24d   :  { %v4256_v2 = vadd.f32 %v4255_v1, %v4254_v25  ;;  %v508_v3 = vadd.f32 %v4253_v0, %v3947_v40 }
 0x24f   :  { %v511_v60 = vadd.f32 %v4256_v2, %v3947_v40 }
 0x25c   :  { %v4637_v4 = vpop.f32.mrb[8].mxu1 }
 0x25d   :  { %v557_v5 = vadd.f32 %v4637_v4, %v508_v3  ;;  %v548_v6 = vpop.f32.mrb[9].mxu1 }
 0x25e   :  { %v549_v33 = vadd.f32 %v548_v6, %v500_v62  ;;  %v4638_v8 = vpop.f32.mrb[10].mxu1 }
 0x25f   :  { %v565_v10 = vmax.f32 %v557_v5, 0.0  ;;  %v560_v11 = vadd.f32 %v4638_v8, %v511_v60  ;;  %v551_v12 = vpop.f32.mrb[11].mxu1 }
 0x260   :  { %v563_v13 = vmax.f32 %v549_v33, 0.0  ;;  %v552_v14 = vadd.f32 %v551_v12, %v503_v9 }
 0x261   :  { %v613_v15 = vrot.slane %v565_v10, %v5150_v7  ;;  %v714_v18 = vcombine.high %v565_v10, %v565_v10  ;;  %v566_v19 = vmax.f32 %v560_v11, 0.0 }
 0x262   :  { %v606_v20 = vrot.slane %v563_v13, %v5150_v7  ;;  %v706_v16 = vcombine.high %v563_v13, %v563_v13  ;;  %v5433_v21 = vmax.f32 %v552_v14, 0.0 }
 0x263   :  { %v653_v23 = vcombine.high %v613_v15, %v613_v15  ;;  %v721_v26 = vrot.slane %v714_v18, %v5150_v7  ;;  %v616_v17 = vrot.slane %v613_v15, 7  ;;  %v5437_v27 = vrot.slane %v566_v19, %v5150_v7 }
 0x264   :  { %v632_v28 = vrot.slane %v606_v20, 1  ;;  %v652_v29 = vcombine.high %v606_v20, %v606_v20  ;;  %v713_v30 = vrot.slane %v706_v16, %v5150_v7  ;;  %v930_v31 = vcombine.high %v566_v19, %v566_v19 }
 0x265   :  { %v761_v32 = vcombine.high %v721_v26, %v721_v26  ;;  %v617_v34 = vsel %vm588_vm2, %v616_v17, %v606_v20  ;;  %v656_v36 = vrot.slane %v653_v23, 7  ;;  %v724_v41 = vrot.slane %v721_v26, 7 }
 0x266   :  { %v618_v42 = vsel %vm590_vm3, %v616_v17, %v617_v34  ;;  %v635_v35 = vsel %vm588_vm2, %v613_v15, %v632_v28  ;;  %v672_v43 = vrot.slane %v652_v29, 1  ;;  %v740_v44 = vrot.slane %v713_v30, 1 }
 0x267   :  { %v619_v47 = vsel %vm592_vm4, %v616_v17, %v618_v42  ;;  %v636_v48 = vsel %vm590_vm3, %v613_v15, %v635_v35  ;;  %v657_v22 = vsel %vm588_vm2, %v656_v36, %v652_v29  ;;  %v725_v49 = vsel %vm588_vm2, %v724_v41, %v713_v30 }
 0x268   :  { %v620_v45 = vsel %vm594_vm5, %v616_v17, %v619_v47  ;;  %v637_v50 = vsel %vm592_vm4, %v613_v15, %v636_v48  ;;  %v658_v51 = vsel %vm590_vm3, %v656_v36, %v657_v22  ;;  %v675_v52 = vsel %vm588_vm2, %v653_v23, %v672_v43 }
 0x269   :  { %622 = vst [vmem:[#allocation4 + $0x2] sm:$0x3] %v620_v45  ;;  %v638_v24 = vsel %vm594_vm5, %v613_v15, %v637_v50  ;;  %v659_v37 = vsel %vm592_vm4, %v656_v36, %v658_v51  ;;  %v676_v53 = vsel %vm590_vm3, %v653_v23, %v675_v52  ;;  %v726_v38 = vsel %vm590_vm3, %v724_v41, %v725_v49 }
 0x26a   :  { %640 = vst [vmem:[#allocation4 + $0x6] sm:$0x3] %v638_v24  ;;  %v660_v46 = vsel %vm594_vm5, %v656_v36, %v659_v37  ;;  %v677_v54 = vsel %vm592_vm4, %v653_v23, %v676_v53  ;;  %v727_v55 = vsel %vm592_vm4, %v724_v41, %v726_v38  ;;  %v743_v56 = vsel %vm588_vm2, %v721_v26, %v740_v44 }
 0x26b   :  { %662 = vst [vmem:[#allocation4 + $0xa] sm:$0x3] %v660_v46  ;;  %v678_v58 = vsel %vm594_vm5, %v653_v23, %v677_v54  ;;  %v728_v59 = vsel %vm594_vm5, %v724_v41, %v727_v55  ;;  %v744_v61 = vsel %vm590_vm3, %v721_v26, %v743_v56  ;;  %v760_v39 = vcombine.high %v713_v30, %v713_v30 }
 0x26c   :  { %680 = vst [vmem:[#allocation4 + $0xe] sm:$0x3] %v678_v58  ;;  %730 = vst [vmem:[#allocation4 + $0x12] sm:$0x3] %v728_v59  ;;  %v745_v57 = vsel %vm592_vm4, %v721_v26, %v744_v61  ;;  %v764_v63 = vrot.slane %v761_v32, 7  ;;  %v869_v0 = vcombine.high %v5437_v27, %v5437_v27  ;;  %v5466_v25 = vrot.slane %v930_v31, %v5150_v7 }
 0x26d   :  { %v746_v1 = vsel %vm594_vm5, %v721_v26, %v745_v57  ;;  %v780_v2 = vrot.slane %v760_v39, 1  ;;  %v822_v40 = vrot.slane %v5433_v21, %v5150_v7  ;;  %v832_v3 = vrot.slane %v5437_v27, 7 }
 0x26e   :  { %748 = vst [vmem:[#allocation4 + $0x16] sm:$0x3] %v746_v1  ;;  %v765_v4 = vsel %vm588_vm2, %v764_v63, %v760_v39  ;;  %v5475_v62 = vcombine.high %v5466_v25, %v5466_v25  ;;  %v872_v5 = vrot.slane %v869_v0, 7  ;;  %v922_v6 = vcombine.high %v5433_v21, %v5433_v21 }
 0x26f   :  { %v766_v60 = vsel %vm590_vm3, %v764_v63, %v765_v4  ;;  %v783_v33 = vsel %vm588_vm2, %v761_v32, %v780_v2  ;;  %v833_v8 = vsel %vm588_vm2, %v832_v3, %v822_v40  ;;  %v848_v9 = vrot.slane %v822_v40, 1 }
 0x270   :  { %v767_v10 = vsel %vm592_vm4, %v764_v63, %v766_v60  ;;  %v784_v11 = vsel %vm590_vm3, %v761_v32, %v783_v33  ;;  %v834_v12 = vsel %vm590_vm3, %v832_v3, %v833_v8  ;;  %v868_v13 = vcombine.high %v822_v40, %v822_v40 }
 0x271   :  { %v768_v14 = vsel %vm594_vm5, %v764_v63, %v767_v10  ;;  %v785_v15 = vsel %vm592_vm4, %v761_v32, %v784_v11  ;;  %v835_v18 = vsel %vm592_vm4, %v832_v3, %v834_v12  ;;  %v851_v19 = vsel %vm588_vm2, %v5437_v27, %v848_v9  ;;  %v1005_v30 = vld [vmem:[#allocation4] sm:$0xff]  ;;  %v4729_v11 = vld [vmem:[%s6319_s5 + $0x108] sm:$0xff]  }
 0x272   :  { %770 = vst [vmem:[#allocation4 + $0x1a] sm:$0x3] %v768_v14  ;;  %v786_v20 = vsel %vm594_vm5, %v761_v32, %v785_v15  ;;  %v836_v16 = vsel %vm594_vm5, %v832_v3, %v835_v18  ;;  %v852_v21 = vsel %vm590_vm3, %v5437_v27, %v851_v19  ;;  %v873_v23 = vsel %vm588_vm2, %v872_v5, %v868_v13  ;;  %v4726_v9 = vld [vmem:[%s6319_s5 + $0x180] sm:$0xff]   ;;  %v4730_v12 = vld [vmem:[%s6319_s5 + $0x1c8] sm:$0xff]   ;;  %v4733_v18 = vld [vmem:[%s6319_s5 + $0x110] sm:$0xff]  }
 0x273   :  { %788 = vst [vmem:[#allocation4 + $0x1e] sm:$0x3] %v786_v20  ;;  %838 = vst [vmem:[#allocation4 + $0x22] sm:$0x3] %v836_v16  ;;  %v853_v26 = vsel %vm592_vm4, %v5437_v27, %v852_v21  ;;  %v874_v17 = vsel %vm590_vm3, %v872_v5, %v873_v23  ;;  %v888_v28 = vrot.slane %v868_v13, 1  ;;  %v929_v29 = vrot.slane %v922_v6, %v5150_v7  ;;  %v1006_v53 = vld [vmem:[#allocation4 + $0x8] sm:$0xff] }
 0x274   :  { %v854_v31 = vsel %vm594_vm5, %v5437_v27, %v853_v26  ;;  %v875_v32 = vsel %vm592_vm4, %v872_v5, %v874_v17  ;;  %v940_v34 = vrot.slane %v5466_v25, 7  ;;  %v980_v36 = vrot.slane %v5475_v62, 7  ;;  %v4727_v6 = vld [vmem:[%s6319_s5 + $0x148] sm:$0xff]   ;;  %v4732_v13 = vld [vmem:[%s6319_s5 + $0x150] sm:$0xff]   ;;  %v4736_v20 = vld [vmem:[%s6319_s5 + $0x158] sm:$0xff]  }
 0x275   :  { %856 = vst [vmem:[#allocation4 + $0x26] sm:$0x3] %v854_v31  ;;  %v876_v41 = vsel %vm594_vm5, %v872_v5, %v875_v32  ;;  %v891_v42 = vsel %vm588_vm2, %v869_v0, %v888_v28  ;;  %v956_v35 = vrot.slane %v929_v29, 1  ;;  %v976_v43 = vcombine.high %v929_v29, %v929_v29  ;;  %v4731_v15 = vld [vmem:[%s6319_s5 + $0x188] sm:$0xff]   ;;  %v4734_v19 = vld [vmem:[%s6319_s5 + $0x1d0] sm:$0xff]   ;;  %v4737_v21 = vld [vmem:[%s6319_s5 + $0x118] sm:$0xff]  }
 0x276   :  { %878 = vst [vmem:[#allocation4 + $0x2a] sm:$0x3] %v876_v41  ;;  %v892_v44 = vsel %vm590_vm3, %v869_v0, %v891_v42  ;;  %v941_v47 = vsel %vm588_vm2, %v940_v34, %v929_v29  ;;  %v1028_v27 = vrot.slane %v1005_v30, %v5150_v7  ;;  %v1021_v48 = vcombine.high %v1005_v30, %v1005_v30  ;;  %v4735_v16 = vld [vmem:[%s6319_s5 + $0x190] sm:$0xff]   ;;  %v4738_v23 = vld [vmem:[%s6319_s5 + $0x1d8] sm:$0xff]   ;;  %v4740_v26 = vld [vmem:[%s6319_s5 + $0x160] sm:$0xff]  }
 0x277   :  { %v893_v22 = vsel %vm592_vm4, %v869_v0, %v892_v44  ;;  %v942_v49 = vsel %vm590_vm3, %v940_v34, %v941_v47  ;;  %v959_v45 = vsel %vm588_vm2, %v5466_v25, %v956_v35  ;;  %v981_v50 = vsel %vm588_vm2, %v980_v36, %v976_v43  ;;  %v4739_v17 = vld [vmem:[%s6319_s5 + $0x198] sm:$0xff]   ;;  %v4741_v28 = vld [vmem:[%s6319_s5 + $0x120] sm:$0xff]   ;;  %v4744_v30 = vld [vmem:[%s6319_s5 + $0x168] sm:$0xff]  }
 0x278   :  { %v894_v51 = vsel %vm594_vm5, %v869_v0, %v893_v22  ;;  %v943_v52 = vsel %vm592_vm4, %v940_v34, %v942_v49  ;;  %v960_v24 = vsel %vm590_vm3, %v5466_v25, %v959_v45  ;;  %v982_v37 = vsel %vm590_vm3, %v980_v36, %v981_v50  ;;  %v4742_v29 = vld [vmem:[%s6319_s5 + $0x1e0] sm:$0xff]   ;;  %v4745_v32 = vld [vmem:[%s6319_s5 + $0x128] sm:$0xff]   ;;  %v1007_v41 = vld [vmem:[#allocation4 + $0x10] sm:$0xff] }
 0x279   :  { %896 = vst [vmem:[#allocation4 + $0x2e] sm:$0x3] %v894_v51  ;;  %v944_v38 = vsel %vm594_vm5, %v940_v34, %v943_v52  ;;  %v961_v46 = vsel %vm592_vm4, %v5466_v25, %v960_v24  ;;  %v983_v54 = vsel %vm592_vm4, %v980_v36, %v982_v37  ;;  %v996_v55 = vrot.slane %v976_v43, 1  ;;  %v4743_v31 = vld [vmem:[%s6319_s5 + $0x1a0] sm:$0xff]   ;;  %v4746_v34 = vld [vmem:[%s6319_s5 + $0x1e8] sm:$0xff]   ;;  %v4749_v35 = vld [vmem:[%s6319_s5 + $0x130] sm:$0xff]  }
 0x27a   :  { %946 = vst [vmem:[#allocation4 + $0x32] sm:$0x3] %v944_v38  ;;  %v962_v56 = vsel %vm594_vm5, %v5466_v25, %v961_v46  ;;  %v984_v58 = vsel %vm594_vm5, %v980_v36, %v983_v54  ;;  %v1036_v59 = vcombine.high %v1028_v27, %v1028_v27  ;;  %v1035_v39 = vrot.slane %v1021_v48, %v5150_v7  ;;  %v4723_v25 = vld [vmem:[%s6319_s5 + $0x100] sm:$0xff]   ;;  %v4748_v36 = vld [vmem:[%s6319_s5 + $0x170] sm:$0xff]   ;;  %v4747_v42 = vld [vmem:[%s6319_s5 + $0x1a8] sm:$0xff]  }
 0x27b   :  { %964 = vst [vmem:[#allocation4 + $0x36] sm:$0x3] %v962_v56  ;;  %986 = vst [vmem:[#allocation4 + $0x3a] sm:$0x3] %v984_v58  ;;  %v999_v61 = vsel %vm588_vm2, %v5475_v62, %v996_v55  ;;  %v5530_v57 = vrot.slane %v1006_v53, %v5150_v7  ;;  %v1038_v63 = vcombine.high %v1006_v53, %v1006_v53  ;;  %v4750_v43 = vld [vmem:[%s6319_s5 + $0x1f0] sm:$0xff]   ;;  %v4752_v44 = vld [vmem:[%s6319_s5 + $0x178] sm:$0xff]  }
 0x27c   :  { %v1000_v0 = vsel %vm590_vm3, %v5475_v62, %v999_v61  ;;  %v1190_v1 = vpack.c.bf16 %v1036_v59, %v1036_v59  ;;  %v1189_v40 = vpack.c.bf16 %v1028_v27, %v1028_v27  ;;  %v1037_v3 = vcombine.high %v1035_v39, %v1035_v39  ;;  %v4751_v48 = vld [vmem:[%s6319_s5 + $0x1b0] sm:$0xff]   ;;  %v4753_v22 = vld [vmem:[%s6319_s5 + $0x138] sm:$0xff]   ;;  %v4756_v45 = vld [vmem:[%s6319_s5 + $0x240] sm:$0xff]  }
 0x27d   :  { %v1001_v2 = vsel %vm592_vm4, %v5475_v62, %v1000_v0  ;;  %v1053_v4 = vcombine.high %v5530_v57, %v5530_v57  ;;  %v5547_v60 = vrot.slane %v1038_v63, %v5150_v7  ;;  %v1191_v10 = vpack.c.bf16 %v1035_v39, %v1035_v39  ;;  %v4754_v49 = vld [vmem:[%s6319_s5 + $0x1f8] sm:$0xff]   ;;  %v4757_v24 = vld [vmem:[%s6319_s5 + $0x200] sm:$0xff]   ;;  %v4761_v46 = vld [vmem:[%s6319_s5 + $0x248] sm:$0xff]  }
 0x27e   :  { %v1002_v5 = vsel %vm594_vm5, %v5475_v62, %v1001_v2  ;;  %3308 = vmatprep.mubr.bf16.mxu0 %v1190_v1  ;;  %v1192_v33 = vpack.c.bf16 %v1037_v3, %v1037_v3  ;;  %v1055_v47 = vcombine.high %v1007_v41, %v1007_v41  ;;  %v5624_v27 = vrot.slane %v1007_v41, %v5150_v7  ;;  %v4755_v52 = vld [vmem:[%s6319_s5 + $0x1b8] sm:$0xff]   ;;  %v4758_v53 = vld [vmem:[%s6319_s5 + $0x2c0] sm:$0xff]   ;;  %v4762_v58 = vld [vmem:[%s6319_s5 + $0x208] sm:$0xff]  }
 0x27f   :  { %1004 = vst [vmem:[#allocation4 + $0x3e] sm:$0x3] %v1002_v5  ;;  %3309 = vmatmul.mubr.bf16.vlgmr.msra.gmra.mrb[8].mxu0 %v1189_v40  ;;  %v1194_v8 = vpack.c.bf16 %v1053_v4, %v1053_v4  ;;  %v1054_v62 = vcombine.high %v5547_v60, %v5547_v60  ;;  %v1193_v37 = vpack.c.bf16 %v5530_v57, %v5530_v57  ;;  %v4759_v55 = vld [vmem:[%s6319_s5 + $0x280] sm:$0xff]   ;;  %v4763_v59 = vld [vmem:[%s6319_s5 + $0x2c8] sm:$0xff]   ;;  %v4765_v39 = vld [vmem:[%s6319_s5 + $0x250] sm:$0xff]  }
 0x280   :  { %4312 = vmatpush3.bf16.msra.mxu0 %v4723_v25  ;;  %3348 = vmatprep.mubr.bf16.mxu1 %v1192_v33  ;;  %v5639_v50 = vrot.slane %v1055_v47, %v5150_v7  ;;  %v1070_v51 = vcombine.high %v5624_v27, %v5624_v27  ;;  %v1195_v56 = vpack.c.bf16 %v5547_v60, %v5547_v60  ;;  %v4764_v57 = vld [vmem:[%s6319_s5 + $0x288] sm:$0xff]   ;;  %v4766_v63 = vld [vmem:[%s6319_s5 + $0x210] sm:$0xff]   ;;  %v4769_v1 = vld [vmem:[%s6319_s5 + $0x258] sm:$0xff]  }
 0x281   :  { %3388 = vmatprep.mubr.bf16.mxu0 %v1194_v8  ;;  %3349 = vmatmul.mubr.bf16.vlgmr.msra.gmra.mrb[12].mxu1 %v1191_v10  ;;  %v1196_v14 = vpack.c.bf16 %v1054_v62, %v1054_v62  ;;  %v4767_v0 = vld [vmem:[%s6319_s5 + $0x2d0] sm:$0xff]   ;;  %v4770_v2 = vld [vmem:[%s6319_s5 + $0x218] sm:$0xff]   ;;  %v4773_v3 = vld [vmem:[%s6319_s5 + $0x260] sm:$0xff]  }
 0x282   :  { %4313 = vmatprep.subr.bf16.mxu0 %v4727_v6  ;;  %4334 = vmatpush3.bf16.msra.mxu1 %v4726_v9  ;;  %v1071_v38 = vcombine.high %v5639_v50, %v5639_v50  ;;  %v1198_v54 = vpack.c.bf16 %v1070_v51, %v1070_v51  ;;  %v4768_v25 = vld [vmem:[%s6319_s5 + $0x290] sm:$0xff]   ;;  %v4771_v40 = vld [vmem:[%s6319_s5 + $0x2d8] sm:$0xff]   ;;  %v4774_v5 = vld [vmem:[%s6319_s5 + $0x220] sm:$0xff]   ;;  %v1199_v41 = vpack.c.bf16 %v5639_v50, %v5639_v50 }
 0x283   :  { %3428 = vmatprep.mubr.bf16.mxu1 %v1196_v14  ;;  %4335 = vmatprep.subr.bf16.mxu1 %v4730_v12  ;;  %v4772_v4 = vld [vmem:[%s6319_s5 + $0x298] sm:$0xff]   ;;  %v4775_v6 = vld [vmem:[%s6319_s5 + $0x2e0] sm:$0xff]   ;;  %v4777_v60 = vld [vmem:[%s6319_s5 + $0x268] sm:$0xff]  }
 0x284   :  { %4314 = vmatpush3.bf16.msra.mxu0 %v4729_v11  ;;  %v1200_v61 = vpack.c.bf16 %v1071_v38, %v1071_v38  ;;  %v4776_v33 = vld [vmem:[%s6319_s5 + $0x2a0] sm:$0xff]   ;;  %v4778_v8 = vld [vmem:[%s6319_s5 + $0x228] sm:$0xff]   ;;  %v4781_v10 = vld [vmem:[%s6319_s5 + $0x270] sm:$0xff]  }
 0x285   :  { %4315 = vmatprep.subr.bf16.mxu0 %v4732_v13  ;;  %v4779_v9 = vld [vmem:[%s6319_s5 + $0x2e8] sm:$0xff]   ;;  %v1008_v62 = vld [vmem:[#allocation4 + $0x18] sm:$0xff]  ;;  %v4782_v12 = vld [vmem:[%s6319_s5 + $0x230] sm:$0xff]  }
 0x286   :  { %4336 = vmatpush3.bf16.msra.mxu1 %v4731_v15  ;;  %v4780_v11 = vld [vmem:[%s6319_s5 + $0x2a8] sm:$0xff]   ;;  %v4783_v13 = vld [vmem:[%s6319_s5 + $0x2f0] sm:$0xff]   ;;  %v4785_v14 = vld [vmem:[%s6319_s5 + $0x278] sm:$0xff]   ;;  %v1072_v15 = vcombine.high %v1008_v62, %v1008_v62 }
 0x287   :  { %4337 = vmatprep.subr.bf16.mxu1 %v4734_v19  ;;  %v4784_v19 = vld [vmem:[%s6319_s5 + $0x2b0] sm:$0xff]   ;;  %v4797_v47 = vld [vmem:[%s6319_s5 + $0x388] sm:$0xff]   ;;  %v4804_v50 = vld [vmem:[%s6319_s5 + $0x3d8] sm:$0xff]  }
 0x288   :  { %4316 = vmatpush3.bf16.msra.mxu0 %v4733_v18  ;;  %v5734_v18 = vrot.slane %v1008_v62, %v5150_v7  ;;  %v4806_v51 = vld [vmem:[%s6319_s5 + $0x360] sm:$0xff]  }
 0x289   :  { %4317 = vmatprep.subr.bf16.mxu0 %v4736_v20  ;;  %v4786_v20 = vld [vmem:[%s6319_s5 + $0x238] sm:$0xff]   ;;  %v4809_v38 = vld [vmem:[%s6319_s5 + $0x3a0] sm:$0xff]  }
 0x28a   :  { %4338 = vmatpush3.bf16.msra.mxu1 %v4735_v16  ;;  %v4787_v16 = vld [vmem:[%s6319_s5 + $0x2f8] sm:$0xff]  }
 0x28b   :  { %4339 = vmatprep.subr.bf16.mxu1 %v4738_v23  ;;  %v5749_v23 = vrot.slane %v1072_v15, %v5150_v7  ;;  %v4830_v15 = vld [vmem:[%s6319_s5 + $0x488] sm:$0xff]  }
 0x28c   :  { %4318 = vmatpush3.bf16.msra.mxu0 %v4737_v21  ;;  %v4789_v21 = vld [vmem:[%s6319_s5 + $0x340] sm:$0xff]  }
 0x28d   :  { %4319 = vmatprep.subr.bf16.mxu0 %v4740_v26  ;;  %v1087_v26 = vcombine.high %v5734_v18, %v5734_v18  ;;  %v1203_v62 = vpack.c.bf16 %v5749_v23, %v5749_v23 }
 0x28e   :  { %4340 = vmatpush3.bf16.msra.mxu1 %v4739_v17  ;;  %v4788_v17 = vld [vmem:[%s6319_s5 + $0x2b8] sm:$0xff]  }
 0x28f   :  { %4341 = vmatprep.subr.bf16.mxu1 %v4742_v29  ;;  %v1197_v29 = vpack.c.bf16 %v5624_v27, %v5624_v27  ;;  %v4799_v27 = vld [vmem:[%s6319_s5 + $0x310] sm:$0xff]  }
 0x290   :  { %4320 = vmatpush3.bf16.msra.mxu0 %v4741_v28  ;;  %v4790_v28 = vld [vmem:[%s6319_s5 + $0x300] sm:$0xff]  }
 0x291   :  { %4321 = vmatprep.subr.bf16.mxu0 %v4744_v30  ;;  %v4791_v30 = vld [vmem:[%s6319_s5 + $0x3c0] sm:$0xff]  }
 0x292   :  { %4342 = vmatpush3.bf16.msra.mxu1 %v4743_v31  ;;  %v1088_v31 = vcombine.high %v5749_v23, %v5749_v23  ;;  %v4837_v23 = vld [vmem:[%s6319_s5 + $0x4d8] sm:$0xff]  }
 0x293   :  { %4343 = vmatprep.subr.bf16.mxu1 %v4746_v34  ;;  %v1202_v34 = vpack.c.bf16 %v1087_v26, %v1087_v26  ;;  %v4839_v26 = vld [vmem:[%s6319_s5 + $0x460] sm:$0xff]  }
 0x294   :  { %4322 = vmatpush3.bf16.msra.mxu0 %v4745_v32  ;;  %v4794_v32 = vld [vmem:[%s6319_s5 + $0x348] sm:$0xff]  }
 0x295   :  { %4323 = vmatprep.subr.bf16.mxu0 %v4748_v36  ;;  %v4792_v36 = vld [vmem:[%s6319_s5 + $0x380] sm:$0xff]  }
 0x296   :  { %4344 = vmatpush3.bf16.msra.mxu1 %v4747_v42  ;;  %v4795_v42 = vld [vmem:[%s6319_s5 + $0x308] sm:$0xff]  }
 0x297   :  { %4345 = vmatprep.subr.bf16.mxu1 %v4750_v43  ;;  %v1204_v43 = vpack.c.bf16 %v1088_v31, %v1088_v31  ;;  %v4842_v31 = vld [vmem:[%s6319_s5 + $0x4a0] sm:$0xff]  }
 0x298   :  { %4324 = vmatpush3.bf16.msra.mxu0 %v4749_v35  ;;  %v4796_v35 = vld [vmem:[%s6319_s5 + $0x3c8] sm:$0xff]  }
 0x299   :  { %4325 = vmatprep.subr.bf16.mxu0 %v4752_v44  ;;  %v4798_v44 = vld [vmem:[%s6319_s5 + $0x350] sm:$0xff]  }
 0x29a   :  { %4346 = vmatpush3.bf16.msra.mxu1 %v4751_v48  ;;  %v4800_v48 = vld [vmem:[%s6319_s5 + $0x3d0] sm:$0xff]  }
 0x29b   :  { %4347 = vmatprep.subr.bf16.mxu1 %v4754_v49  ;;  %v4801_v49 = vld [vmem:[%s6319_s5 + $0x390] sm:$0xff]  }
 0x29c   :  { %4326 = vmatpush3.bf16.msra.mxu0 %v4753_v22  ;;  %v4802_v22 = vld [vmem:[%s6319_s5 + $0x358] sm:$0xff]  }
 0x29d   :  { %4355 = vmatprep.subr.bf16.mxu0 %v4756_v45  ;;  %v4803_v45 = vld [vmem:[%s6319_s5 + $0x318] sm:$0xff]  }
 0x29e   :  { %4348 = vmatpush3.bf16.msra.mxu1 %v4755_v52  ;;  %v4805_v52 = vld [vmem:[%s6319_s5 + $0x398] sm:$0xff]  }
 0x29f   :  { %3389 = vmatmul.mubr.bf16.vlgmr.msra.gmra.mrb[12].mxu0 %v1193_v37  ;;  %4377 = vmatprep.subr.bf16.mxu1 %v4758_v53  ;;  %v4808_v37 = vld [vmem:[%s6319_s5 + $0x3e0] sm:$0xff]   ;;  %v4810_v53 = vld [vmem:[%s6319_s5 + $0x368] sm:$0xff]  }
 0x2a0   :  { %4356 = vmatpush3.bf16.msra.mxu0 %v4757_v24  ;;  %3468 = vmatprep.mubr.bf16.mxu0 %v1198_v54  ;;  %v4807_v24 = vld [vmem:[%s6319_s5 + $0x320] sm:$0xff]   ;;  %v4812_v54 = vld [vmem:[%s6319_s5 + $0x3e8] sm:$0xff]  }
 0x2a1   :  { %4357 = vmatprep.subr.bf16.mxu0 %v4761_v46  ;;  %3429 = vmatmul.mubr.bf16.vlgmr.msra.gmra.mrb[16].mxu1 %v1195_v56  ;;  %v4811_v46 = vld [vmem:[%s6319_s5 + $0x328] sm:$0xff]   ;;  %v1009_v56 = vld [vmem:[#allocation4 + $0x20] sm:$0xff] }
 0x2a2   :  { %4378 = vmatpush3.bf16.msra.mxu1 %v4759_v55  ;;  %3508 = vmatprep.mubr.bf16.mxu1 %v1200_v61  ;;  %v4814_v55 = vld [vmem:[%s6319_s5 + $0x370] sm:$0xff]  }
 0x2a3   :  { %4379 = vmatprep.subr.bf16.mxu1 %v4763_v59  ;;  %v4815_v59 = vld [vmem:[%s6319_s5 + $0x330] sm:$0xff]  }
 0x2a4   :  { %4358 = vmatpush3.bf16.msra.mxu0 %v4762_v58  ;;  %v4813_v58 = vld [vmem:[%s6319_s5 + $0x3a8] sm:$0xff]   ;;  %v4816_v61 = vld [vmem:[%s6319_s5 + $0x3f0] sm:$0xff]  }
 0x2a5   :  { %4359 = vmatprep.subr.bf16.mxu0 %v4765_v39  ;;  %v4818_v39 = vld [vmem:[%s6319_s5 + $0x378] sm:$0xff]  }
 0x2a6   :  { %4380 = vmatpush3.bf16.msra.mxu1 %v4764_v57  ;;  %v1089_v57 = vcombine.high %v1009_v56, %v1009_v56 }
 0x2a7   :  { %4381 = vmatprep.subr.bf16.mxu1 %v4767_v0  ;;  %v4817_v0 = vld [vmem:[%s6319_s5 + $0x3b0] sm:$0xff]  }
 0x2a8   :  { %4360 = vmatpush3.bf16.msra.mxu0 %v4766_v63  ;;  %v5844_v63 = vrot.slane %v1009_v56, %v5150_v7 }
 0x2a9   :  { %4361 = vmatprep.subr.bf16.mxu0 %v4769_v1  ;;  %v4819_v1 = vld [vmem:[%s6319_s5 + $0x338] sm:$0xff]  }
 0x2aa   :  { %4382 = vmatpush3.bf16.msra.mxu1 %v4768_v25  ;;  %v4820_v25 = vld [vmem:[%s6319_s5 + $0x3f8] sm:$0xff]  }
 0x2ab   :  { %4383 = vmatprep.subr.bf16.mxu1 %v4771_v40  ;;  %v5859_v40 = vrot.slane %v1089_v57, %v5150_v7  ;;  %v4863_v57 = vld [vmem:[%s6319_s5 + $0x588] sm:$0xff]  }
 0x2ac   :  { %4362 = vmatpush3.bf16.msra.mxu0 %v4770_v2  ;;  %v4822_v2 = vld [vmem:[%s6319_s5 + $0x440] sm:$0xff]  }
 0x2ad   :  { %4363 = vmatprep.subr.bf16.mxu0 %v4773_v3  ;;  %v1104_v3 = vcombine.high %v5844_v63, %v5844_v63  ;;  %v1207_v56 = vpack.c.bf16 %v5859_v40, %v5859_v40 }
 0x2ae   :  { %4384 = vmatpush3.bf16.msra.mxu1 %v4772_v4  ;;  %v4821_v4 = vld [vmem:[%s6319_s5 + $0x3b8] sm:$0xff]  }
 0x2af   :  { %4385 = vmatprep.subr.bf16.mxu1 %v4775_v6  ;;  %v1201_v6 = vpack.c.bf16 %v5734_v18, %v5734_v18  ;;  %v4832_v18 = vld [vmem:[%s6319_s5 + $0x410] sm:$0xff]  }
 0x2b0   :  { %4364 = vmatpush3.bf16.msra.mxu0 %v4774_v5  ;;  %v4823_v5 = vld [vmem:[%s6319_s5 + $0x400] sm:$0xff]  }
 0x2b1   :  { %4365 = vmatprep.subr.bf16.mxu0 %v4777_v60  ;;  %v4824_v60 = vld [vmem:[%s6319_s5 + $0x4c0] sm:$0xff]  }
 0x2b2   :  { %4386 = vmatpush3.bf16.msra.mxu1 %v4776_v33  ;;  %v1105_v33 = vcombine.high %v5859_v40, %v5859_v40  ;;  %v4870_v40 = vld [vmem:[%s6319_s5 + $0x5d8] sm:$0xff]  }
 0x2b3   :  { %4387 = vmatprep.subr.bf16.mxu1 %v4779_v9  ;;  %v1206_v9 = vpack.c.bf16 %v1104_v3, %v1104_v3  ;;  %v4872_v3 = vld [vmem:[%s6319_s5 + $0x560] sm:$0xff]  }
 0x2b4   :  { %4366 = vmatpush3.bf16.msra.mxu0 %v4778_v8  ;;  %v4827_v8 = vld [vmem:[%s6319_s5 + $0x448] sm:$0xff]  }
 0x2b5   :  { %4367 = vmatprep.subr.bf16.mxu0 %v4781_v10  ;;  %v4825_v10 = vld [vmem:[%s6319_s5 + $0x480] sm:$0xff]  }
 0x2b6   :  { %4388 = vmatpush3.bf16.msra.mxu1 %v4780_v11  ;;  %v4828_v11 = vld [vmem:[%s6319_s5 + $0x408] sm:$0xff]  }
 0x2b7   :  { %4389 = vmatprep.subr.bf16.mxu1 %v4783_v13  ;;  %v1208_v13 = vpack.c.bf16 %v1105_v33, %v1105_v33  ;;  %v4875_v33 = vld [vmem:[%s6319_s5 + $0x5a0] sm:$0xff]  }
 0x2b8   :  { %4368 = vmatpush3.bf16.msra.mxu0 %v4782_v12  ;;  %v4829_v12 = vld [vmem:[%s6319_s5 + $0x4c8] sm:$0xff]  }
 0x2b9   :  { %4369 = vmatprep.subr.bf16.mxu0 %v4785_v14  ;;  %v4831_v14 = vld [vmem:[%s6319_s5 + $0x450] sm:$0xff]  }
 0x2ba   :  { %4390 = vmatpush3.bf16.msra.mxu1 %v4784_v19  ;;  %v4833_v19 = vld [vmem:[%s6319_s5 + $0x4d0] sm:$0xff]  }
 0x2bb   :  { %4391 = vmatprep.subr.bf16.mxu1 %v4787_v16  ;;  %v4834_v16 = vld [vmem:[%s6319_s5 + $0x490] sm:$0xff]  }
 0x2bc   :  { %4370 = vmatpush3.bf16.msra.mxu0 %v4786_v20  ;;  %v4835_v20 = vld [vmem:[%s6319_s5 + $0x458] sm:$0xff]  }
 0x2bd   :  { %4399 = vmatprep.subr.bf16.mxu0 %v4789_v21  ;;  %v4836_v21 = vld [vmem:[%s6319_s5 + $0x418] sm:$0xff]  }
 0x2be   :  { %4392 = vmatpush3.bf16.msra.mxu1 %v4788_v17  ;;  %v4838_v17 = vld [vmem:[%s6319_s5 + $0x498] sm:$0xff]  }
 0x2bf   :  { %3469 = vmatmul.mubr.bf16.vlgmr.msra.gmra.mrb[16].mxu0 %v1197_v29  ;;  %4421 = vmatprep.subr.bf16.mxu1 %v4791_v30  ;;  %v4841_v29 = vld [vmem:[%s6319_s5 + $0x4e0] sm:$0xff]   ;;  %v4843_v30 = vld [vmem:[%s6319_s5 + $0x468] sm:$0xff]  }
 0x2c0   :  { %4400 = vmatpush3.bf16.msra.mxu0 %v4790_v28  ;;  %3548 = vmatprep.mubr.bf16.mxu0 %v1202_v34  ;;  %v4840_v28 = vld [vmem:[%s6319_s5 + $0x420] sm:$0xff]   ;;  %v4845_v34 = vld [vmem:[%s6319_s5 + $0x4e8] sm:$0xff]  }
 0x2c1   :  { %4401 = vmatprep.subr.bf16.mxu0 %v4794_v32  ;;  %3509 = vmatmul.mubr.bf16.vlgmr.msra.gmra.mrb[20].mxu1 %v1199_v41  ;;  %v4844_v32 = vld [vmem:[%s6319_s5 + $0x428] sm:$0xff]  }
 0x2c2   :  { %4422 = vmatpush3.bf16.msra.mxu1 %v4792_v36  ;;  %3588 = vmatprep.mubr.bf16.mxu1 %v1204_v43  ;;  %v4847_v36 = vld [vmem:[%s6319_s5 + $0x470] sm:$0xff]   ;;  %v1010_v41 = vld [vmem:[#allocation4 + $0x28] sm:$0xff] }
 0x2c3   :  { %4423 = vmatprep.subr.bf16.mxu1 %v4796_v35  ;;  %v4848_v35 = vld [vmem:[%s6319_s5 + $0x430] sm:$0xff]  }
 0x2c4   :  { %4402 = vmatpush3.bf16.msra.mxu0 %v4795_v42  ;;  %v4846_v42 = vld [vmem:[%s6319_s5 + $0x4a8] sm:$0xff]   ;;  %v4849_v43 = vld [vmem:[%s6319_s5 + $0x4f0] sm:$0xff]  }
 0x2c5   :  { %4403 = vmatprep.subr.bf16.mxu0 %v4798_v44  ;;  %v4851_v44 = vld [vmem:[%s6319_s5 + $0x478] sm:$0xff]  }
 0x2c6   :  { %4424 = vmatpush3.bf16.msra.mxu1 %v4797_v47  ;;  %v1106_v47 = vcombine.high %v1010_v41, %v1010_v41 }
 0x2c7   :  { %4425 = vmatprep.subr.bf16.mxu1 %v4800_v48  ;;  %v4850_v48 = vld [vmem:[%s6319_s5 + $0x4b0] sm:$0xff]  }
 0x2c8   :  { %4404 = vmatpush3.bf16.msra.mxu0 %v4799_v27  ;;  %v5954_v27 = vrot.slane %v1010_v41, %v5150_v7 }
 0x2c9   :  { %4405 = vmatprep.subr.bf16.mxu0 %v4802_v22  ;;  %v4852_v22 = vld [vmem:[%s6319_s5 + $0x438] sm:$0xff]  }
 0x2ca   :  { %4426 = vmatpush3.bf16.msra.mxu1 %v4801_v49  ;;  %v4853_v49 = vld [vmem:[%s6319_s5 + $0x4f8] sm:$0xff]  }
 0x2cb   :  { %4427 = vmatprep.subr.bf16.mxu1 %v4804_v50  ;;  %v5969_v50 = vrot.slane %v1106_v47, %v5150_v7  ;;  %v4896_v47 = vld [vmem:[%s6319_s5 + $0x688] sm:$0xff]  }
 0x2cc   :  { %4406 = vmatpush3.bf16.msra.mxu0 %v4803_v45  ;;  %v4855_v45 = vld [vmem:[%s6319_s5 + $0x540] sm:$0xff]  }
 0x2cd   :  { %4407 = vmatprep.subr.bf16.mxu0 %v4806_v51  ;;  %v1121_v51 = vcombine.high %v5954_v27, %v5954_v27  ;;  %v1211_v41 = vpack.c.bf16 %v5969_v50, %v5969_v50 }
 0x2ce   :  { %4428 = vmatpush3.bf16.msra.mxu1 %v4805_v52  ;;  %v4854_v52 = vld [vmem:[%s6319_s5 + $0x4b8] sm:$0xff]  }
 0x2cf   :  { %4429 = vmatprep.subr.bf16.mxu1 %v4808_v37  ;;  %v1205_v37 = vpack.c.bf16 %v5844_v63, %v5844_v63  ;;  %v4865_v63 = vld [vmem:[%s6319_s5 + $0x510] sm:$0xff]  }
 0x2d0   :  { %4408 = vmatpush3.bf16.msra.mxu0 %v4807_v24  ;;  %v4856_v24 = vld [vmem:[%s6319_s5 + $0x500] sm:$0xff]  }
 0x2d1   :  { %4409 = vmatprep.subr.bf16.mxu0 %v4810_v53  ;;  %v4857_v53 = vld [vmem:[%s6319_s5 + $0x5c0] sm:$0xff]  }
 0x2d2   :  { %4430 = vmatpush3.bf16.msra.mxu1 %v4809_v38  ;;  %v1122_v38 = vcombine.high %v5969_v50, %v5969_v50  ;;  %v4903_v50 = vld [vmem:[%s6319_s5 + $0x6d8] sm:$0xff]  }
 0x2d3   :  { %4431 = vmatprep.subr.bf16.mxu1 %v4812_v54  ;;  %v1210_v54 = vpack.c.bf16 %v1121_v51, %v1121_v51  ;;  %v4905_v51 = vld [vmem:[%s6319_s5 + $0x660] sm:$0xff]  }
 0x2d4   :  { %4410 = vmatpush3.bf16.msra.mxu0 %v4811_v46  ;;  %v4860_v46 = vld [vmem:[%s6319_s5 + $0x548] sm:$0xff]  }
 0x2d5   :  { %4411 = vmatprep.subr.bf16.mxu0 %v4814_v55  ;;  %v4858_v55 = vld [vmem:[%s6319_s5 + $0x580] sm:$0xff]  }
 0x2d6   :  { %4432 = vmatpush3.bf16.msra.mxu1 %v4813_v58  ;;  %v4861_v58 = vld [vmem:[%s6319_s5 + $0x508] sm:$0xff]  }
 0x2d7   :  { %4433 = vmatprep.subr.bf16.mxu1 %v4816_v61  ;;  %v1212_v61 = vpack.c.bf16 %v1122_v38, %v1122_v38  ;;  %v4908_v38 = vld [vmem:[%s6319_s5 + $0x6a0] sm:$0xff]  }
 0x2d8   :  { %4412 = vmatpush3.bf16.msra.mxu0 %v4815_v59  ;;  %v4862_v59 = vld [vmem:[%s6319_s5 + $0x5c8] sm:$0xff]  }
 0x2d9   :  { %4413 = vmatprep.subr.bf16.mxu0 %v4818_v39  ;;  %v4864_v39 = vld [vmem:[%s6319_s5 + $0x550] sm:$0xff]  }
 0x2da   :  { %4434 = vmatpush3.bf16.msra.mxu1 %v4817_v0  ;;  %v4866_v0 = vld [vmem:[%s6319_s5 + $0x5d0] sm:$0xff]  }
 0x2db   :  { %4435 = vmatprep.subr.bf16.mxu1 %v4820_v25  ;;  %v4867_v25 = vld [vmem:[%s6319_s5 + $0x590] sm:$0xff]  }
 0x2dc   :  { %4414 = vmatpush3.bf16.msra.mxu0 %v4819_v1  ;;  %v4868_v1 = vld [vmem:[%s6319_s5 + $0x558] sm:$0xff]  }
 0x2dd   :  { %4443 = vmatprep.subr.bf16.mxu0 %v4822_v2  ;;  %v4869_v2 = vld [vmem:[%s6319_s5 + $0x518] sm:$0xff]  }
 0x2de   :  { %4436 = vmatpush3.bf16.msra.mxu1 %v4821_v4  ;;  %v4871_v4 = vld [vmem:[%s6319_s5 + $0x598] sm:$0xff]  }
 0x2df   :  { %3549 = vmatmul.mubr.bf16.vlgmr.msra.gmra.mrb[20].mxu0 %v1201_v6  ;;  %4465 = vmatprep.subr.bf16.mxu1 %v4824_v60  ;;  %v4874_v6 = vld [vmem:[%s6319_s5 + $0x5e0] sm:$0xff]   ;;  %v4876_v60 = vld [vmem:[%s6319_s5 + $0x568] sm:$0xff]  }
 0x2e0   :  { %4444 = vmatpush3.bf16.msra.mxu0 %v4823_v5  ;;  %3628 = vmatprep.mubr.bf16.mxu0 %v1206_v9  ;;  %v4873_v5 = vld [vmem:[%s6319_s5 + $0x520] sm:$0xff]   ;;  %v4878_v9 = vld [vmem:[%s6319_s5 + $0x5e8] sm:$0xff]  }
 0x2e1   :  { %4445 = vmatprep.subr.bf16.mxu0 %v4827_v8  ;;  %3589 = vmatmul.mubr.bf16.vlgmr.msra.gmra.mrb[24].mxu1 %v1203_v62  ;;  %v4877_v8 = vld [vmem:[%s6319_s5 + $0x528] sm:$0xff]   ;;  %v1011_v62 = vld [vmem:[#allocation4 + $0x30] sm:$0xff] }
 0x2e2   :  { %4466 = vmatpush3.bf16.msra.mxu1 %v4825_v10  ;;  %3668 = vmatprep.mubr.bf16.mxu1 %v1208_v13  ;;  %v4880_v10 = vld [vmem:[%s6319_s5 + $0x570] sm:$0xff]  }
 0x2e3   :  { %4467 = vmatprep.subr.bf16.mxu1 %v4829_v12  ;;  %v4881_v12 = vld [vmem:[%s6319_s5 + $0x530] sm:$0xff]  }
 0x2e4   :  { %4446 = vmatpush3.bf16.msra.mxu0 %v4828_v11  ;;  %v4879_v11 = vld [vmem:[%s6319_s5 + $0x5a8] sm:$0xff]   ;;  %v4882_v13 = vld [vmem:[%s6319_s5 + $0x5f0] sm:$0xff]  }
 0x2e5   :  { %4447 = vmatprep.subr.bf16.mxu0 %v4831_v14  ;;  %v4884_v14 = vld [vmem:[%s6319_s5 + $0x578] sm:$0xff]  }
 0x2e6   :  { %4468 = vmatpush3.bf16.msra.mxu1 %v4830_v15  ;;  %v1123_v15 = vcombine.high %v1011_v62, %v1011_v62 }
 0x2e7   :  { %4469 = vmatprep.subr.bf16.mxu1 %v4833_v19  ;;  %v4883_v19 = vld [vmem:[%s6319_s5 + $0x5b0] sm:$0xff]  }
 0x2e8   :  { %4448 = vmatpush3.bf16.msra.mxu0 %v4832_v18  ;;  %v6064_v18 = vrot.slane %v1011_v62, %v5150_v7  ;;  %v4927_v62 = vld [vmem:[%s6319_s5 + $0x708] sm:$0xff]  }
 0x2e9   :  { %4449 = vmatprep.subr.bf16.mxu0 %v4835_v20  ;;  %v4885_v20 = vld [vmem:[%s6319_s5 + $0x538] sm:$0xff]  }
 0x2ea   :  { %4470 = vmatpush3.bf16.msra.mxu1 %v4834_v16  ;;  %v4886_v16 = vld [vmem:[%s6319_s5 + $0x5f8] sm:$0xff]  }
 0x2eb   :  { %4471 = vmatprep.subr.bf16.mxu1 %v4837_v23  ;;  %v6079_v23 = vrot.slane %v1123_v15, %v5150_v7  ;;  %v4931_v15 = vld [vmem:[%s6319_s5 + $0x710] sm:$0xff]  }
 0x2ec   :  { %4450 = vmatpush3.bf16.msra.mxu0 %v4836_v21  ;;  %v4888_v21 = vld [vmem:[%s6319_s5 + $0x640] sm:$0xff]  }
 0x2ed   :  { %4451 = vmatprep.subr.bf16.mxu0 %v4839_v26  ;;  %v1138_v26 = vcombine.high %v6064_v18, %v6064_v18 }
 0x2ee   :  { %4472 = vmatpush3.bf16.msra.mxu1 %v4838_v17  ;;  %v4887_v17 = vld [vmem:[%s6319_s5 + $0x5b8] sm:$0xff]  }
 0x2ef   :  { %4473 = vmatprep.subr.bf16.mxu1 %v4841_v29  ;;  %v1209_v29 = vpack.c.bf16 %v5954_v27, %v5954_v27  ;;  %v4898_v27 = vld [vmem:[%s6319_s5 + $0x610] sm:$0xff]  }
 0x2f0   :  { %4452 = vmatpush3.bf16.msra.mxu0 %v4840_v28  ;;  %v4889_v28 = vld [vmem:[%s6319_s5 + $0x600] sm:$0xff]  }
 0x2f1   :  { %4453 = vmatprep.subr.bf16.mxu0 %v4843_v30  ;;  %v4890_v30 = vld [vmem:[%s6319_s5 + $0x6c0] sm:$0xff]  }
 0x2f2   :  { %4474 = vmatpush3.bf16.msra.mxu1 %v4842_v31  ;;  %v1139_v31 = vcombine.high %v6079_v23, %v6079_v23 }
 0x2f3   :  { %4475 = vmatprep.subr.bf16.mxu1 %v4845_v34  ;;  %v1214_v34 = vpack.c.bf16 %v1138_v26, %v1138_v26  ;;  %v4937_v26 = vld [vmem:[%s6319_s5 + $0x798] sm:$0xff]  }
 0x2f4   :  { %4454 = vmatpush3.bf16.msra.mxu0 %v4844_v32  ;;  %v4893_v32 = vld [vmem:[%s6319_s5 + $0x648] sm:$0xff]  }
 0x2f5   :  { %4455 = vmatprep.subr.bf16.mxu0 %v4847_v36  ;;  %v4891_v36 = vld [vmem:[%s6319_s5 + $0x680] sm:$0xff]  }
 0x2f6   :  { %4476 = vmatpush3.bf16.msra.mxu1 %v4846_v42  ;;  %v4894_v42 = vld [vmem:[%s6319_s5 + $0x608] sm:$0xff]  }
 0x2f7   :  { %4477 = vmatprep.subr.bf16.mxu1 %v4849_v43  ;;  %v1216_v43 = vpack.c.bf16 %v1139_v31, %v1139_v31  ;;  %v4943_v31 = vld [vmem:[%s6319_s5 + $0x728] sm:$0xff]  }
 0x2f8   :  { %4456 = vmatpush3.bf16.msra.mxu0 %v4848_v35  ;;  %v4895_v35 = vld [vmem:[%s6319_s5 + $0x6c8] sm:$0xff]  }
 0x2f9   :  { %4457 = vmatprep.subr.bf16.mxu0 %v4851_v44  ;;  %v4897_v44 = vld [vmem:[%s6319_s5 + $0x650] sm:$0xff]  }
 0x2fa   :  { %4478 = vmatpush3.bf16.msra.mxu1 %v4850_v48  ;;  %v4899_v48 = vld [vmem:[%s6319_s5 + $0x6d0] sm:$0xff]  }
 0x2fb   :  { %4479 = vmatprep.subr.bf16.mxu1 %v4853_v49  ;;  %v4900_v49 = vld [vmem:[%s6319_s5 + $0x690] sm:$0xff]  }
 0x2fc   :  { %4458 = vmatpush3.bf16.msra.mxu0 %v4852_v22  ;;  %v4901_v22 = vld [vmem:[%s6319_s5 + $0x658] sm:$0xff]  }
 0x2fd   :  { %4487 = vmatprep.subr.bf16.mxu0 %v4855_v45  ;;  %v4902_v45 = vld [vmem:[%s6319_s5 + $0x618] sm:$0xff]  }
 0x2fe   :  { %4480 = vmatpush3.bf16.msra.mxu1 %v4854_v52  ;;  %v4904_v52 = vld [vmem:[%s6319_s5 + $0x698] sm:$0xff]  }
 0x2ff   :  { %3629 = vmatmul.mubr.bf16.vlgmr.msra.gmra.mrb[24].mxu0 %v1205_v37  ;;  %4509 = vmatprep.subr.bf16.mxu1 %v4857_v53  ;;  %v4907_v37 = vld [vmem:[%s6319_s5 + $0x6e0] sm:$0xff]   ;;  %v4909_v53 = vld [vmem:[%s6319_s5 + $0x668] sm:$0xff]  }
 0x300   :  { %4488 = vmatpush3.bf16.msra.mxu0 %v4856_v24  ;;  %3708 = vmatprep.mubr.bf16.mxu0 %v1210_v54  ;;  %v4906_v24 = vld [vmem:[%s6319_s5 + $0x620] sm:$0xff]   ;;  %v4911_v54 = vld [vmem:[%s6319_s5 + $0x6e8] sm:$0xff]  }
 0x301   :  { %4489 = vmatprep.subr.bf16.mxu0 %v4860_v46  ;;  %3669 = vmatmul.mubr.bf16.vlgmr.msra.gmra.mrb[28].mxu1 %v1207_v56  ;;  %v4910_v46 = vld [vmem:[%s6319_s5 + $0x628] sm:$0xff]   ;;  %v1012_v56 = vld [vmem:[#allocation4 + $0x38] sm:$0xff] }
 0x302   :  { %4510 = vmatpush3.bf16.msra.mxu1 %v4858_v55  ;;  %3748 = vmatprep.mubr.bf16.mxu1 %v1212_v61  ;;  %v4913_v55 = vld [vmem:[%s6319_s5 + $0x670] sm:$0xff]  }
 0x303   :  { %4511 = vmatprep.subr.bf16.mxu1 %v4862_v59  ;;  %v4914_v59 = vld [vmem:[%s6319_s5 + $0x630] sm:$0xff]  }
 0x304   :  { %4490 = vmatpush3.bf16.msra.mxu0 %v4861_v58  ;;  %v4912_v58 = vld [vmem:[%s6319_s5 + $0x6a8] sm:$0xff]   ;;  %v4915_v61 = vld [vmem:[%s6319_s5 + $0x6f0] sm:$0xff]  }
 0x305   :  { %4491 = vmatprep.subr.bf16.mxu0 %v4864_v39  ;;  %v4917_v39 = vld [vmem:[%s6319_s5 + $0x678] sm:$0xff]  }
 0x306   :  { %4512 = vmatpush3.bf16.msra.mxu1 %v4863_v57  ;;  %v1140_v57 = vcombine.high %v1012_v56, %v1012_v56 }
 0x307   :  { %4513 = vmatprep.subr.bf16.mxu1 %v4866_v0  ;;  %v4916_v0 = vld [vmem:[%s6319_s5 + $0x6b0] sm:$0xff]  }
 0x308   :  { %4492 = vmatpush3.bf16.msra.mxu0 %v4865_v63  ;;  %v6174_v63 = vrot.slane %v1012_v56, %v5150_v7 }
 0x309   :  { %4493 = vmatprep.subr.bf16.mxu0 %v4868_v1  ;;  %v4918_v1 = vld [vmem:[%s6319_s5 + $0x638] sm:$0xff]  }
 0x30a   :  { %4514 = vmatpush3.bf16.msra.mxu1 %v4867_v25  ;;  %v4919_v25 = vld [vmem:[%s6319_s5 + $0x6f8] sm:$0xff]  }
 0x30b   :  { %4515 = vmatprep.subr.bf16.mxu1 %v4870_v40  ;;  %v6189_v40 = vrot.slane %v1140_v57, %v5150_v7  ;;  %v4923_v7 = vld [vmem:[%s6319_s5 + $0x7c0] sm:$0xff]  }
 0x30c   :  { %4494 = vmatpush3.bf16.msra.mxu0 %v4869_v2  ;;  %v4921_v2 = vld [vmem:[%s6319_s5 + $0x740] sm:$0xff]  }
 0x30d   :  { %4495 = vmatprep.subr.bf16.mxu0 %v4872_v3  ;;  %v1155_v3 = vcombine.high %v6174_v63, %v6174_v63  ;;  %v1219_v56 = vpack.c.bf16 %v6189_v40, %v6189_v40 }
 0x30e   :  { %4516 = vmatpush3.bf16.msra.mxu1 %v4871_v4  ;;  %v4920_v4 = vld [vmem:[%s6319_s5 + $0x6b8] sm:$0xff]  }
 0x30f   :  { %4517 = vmatprep.subr.bf16.mxu1 %v4874_v6  ;;  %v1213_v6 = vpack.c.bf16 %v6064_v18, %v6064_v18  ;;  %v4932_v18 = vld [vmem:[%s6319_s5 + $0x7d0] sm:$0xff]  }
 0x310   :  { %4496 = vmatpush3.bf16.msra.mxu0 %v4873_v5  ;;  %v4922_v5 = vld [vmem:[%s6319_s5 + $0x700] sm:$0xff]  }
 0x311   :  { %4497 = vmatprep.subr.bf16.mxu0 %v4876_v60  ;;  %v1156_v60 = vcombine.high %v6189_v40, %v6189_v40 }
 0x312   :  { %4518 = vmatpush3.bf16.msra.mxu1 %v4875_v33  ;;  %v4926_v33 = vld [vmem:[%s6319_s5 + $0x748] sm:$0xff]  }
 0x313   :  { %4519 = vmatprep.subr.bf16.mxu1 %v4878_v9  ;;  %v4924_v9 = vld [vmem:[%s6319_s5 + $0x780] sm:$0xff]  }
 0x314   :  { %4498 = vmatpush3.bf16.msra.mxu0 %v4877_v8  ;;  %v1218_v8 = vpack.c.bf16 %v1155_v3, %v1155_v3 }
 0x315   :  { %4499 = vmatprep.subr.bf16.mxu0 %v4880_v10  ;;  %v1215_v10 = vpack.c.bf16 %v6079_v23, %v6079_v23  ;;  %v4938_v23 = vld [vmem:[%s6319_s5 + $0x760] sm:$0xff]  }
 0x316   :  { %4520 = vmatpush3.bf16.msra.mxu1 %v4879_v11  ;;  %v4928_v11 = vld [vmem:[%s6319_s5 + $0x7c8] sm:$0xff]  }
 0x317   :  { %4521 = vmatprep.subr.bf16.mxu1 %v4882_v13  ;;  %v4930_v13 = vld [vmem:[%s6319_s5 + $0x750] sm:$0xff]  }
 0x318   :  { %4500 = vmatpush3.bf16.msra.mxu0 %v4881_v12  ;;  %v1220_v12 = vpack.c.bf16 %v1156_v60, %v1156_v60 }
 0x319   :  { %4501 = vmatprep.subr.bf16.mxu0 %v4884_v14  ;;  %v4929_v14 = vld [vmem:[%s6319_s5 + $0x788] sm:$0xff]  }
 0x31a   :  { %4522 = vmatpush3.bf16.msra.mxu1 %v4883_v19  ;;  %v4934_v19 = vld [vmem:[%s6319_s5 + $0x758] sm:$0xff]  }
 0x31b   :  { %4523 = vmatprep.subr.bf16.mxu1 %v4886_v16  ;;  %v4935_v16 = vld [vmem:[%s6319_s5 + $0x718] sm:$0xff]  }
 0x31c   :  { %4502 = vmatpush3.bf16.msra.mxu0 %v4885_v20  ;;  %v4933_v20 = vld [vmem:[%s6319_s5 + $0x790] sm:$0xff]  }
 0x31d   :  { %4531 = vmatprep.subr.bf16.mxu0 %v4888_v21  ;;  %v4936_v21 = vld [vmem:[%s6319_s5 + $0x7d8] sm:$0xff]  }
 0x31e   :  { %4524 = vmatpush3.bf16.msra.mxu1 %v4887_v17  ;;  %v4939_v17 = vld [vmem:[%s6319_s5 + $0x720] sm:$0xff]  }
 0x31f   :  { %3709 = vmatmul.mubr.bf16.vlgmr.msra.gmra.mrb[28].mxu0 %v1209_v29  ;;  %4553 = vmatprep.subr.bf16.mxu1 %v4890_v30  ;;  %v4942_v29 = vld [vmem:[%s6319_s5 + $0x768] sm:$0xff]   ;;  %v4941_v30 = vld [vmem:[%s6319_s5 + $0x7a0] sm:$0xff]  }
 0x320   :  { %4532 = vmatpush3.bf16.msra.mxu0 %v4889_v28  ;;  %3788 = vmatprep.mubr.bf16.mxu0 %v1214_v34  ;;  %v4940_v28 = vld [vmem:[%s6319_s5 + $0x7e0] sm:$0xff]   ;;  %v4946_v34 = vld [vmem:[%s6319_s5 + $0x770] sm:$0xff]  }
 0x321   :  { %4533 = vmatprep.subr.bf16.mxu0 %v4893_v32  ;;  %3749 = vmatmul.mubr.bf16.vlgmr.msra.gmra.mrb[32].mxu1 %v1211_v41  ;;  %v4944_v32 = vld [vmem:[%s6319_s5 + $0x7e8] sm:$0xff]   ;;  %v3972_v41 = vld [vmem:[%s6320_s6] ss:$0 sm:$0xff] }
 0x322   :  { %4554 = vmatpush3.bf16.msra.mxu1 %v4891_v36  ;;  %3828 = vmatprep.mubr.bf16.mxu1 %v1216_v43 }
 0x323   :  { %4555 = vmatprep.subr.bf16.mxu1 %v4895_v35  ;;  %v4945_v35 = vld [vmem:[%s6319_s5 + $0x7a8] sm:$0xff]  }
 0x324   :  { %4534 = vmatpush3.bf16.msra.mxu0 %v4894_v42 }
 0x325   :  { %4535 = vmatprep.subr.bf16.mxu0 %v4897_v44 }
 0x326   :  { %4556 = vmatpush3.bf16.msra.mxu1 %v4896_v47  ;;  %v4947_v47 = vld [vmem:[%s6319_s5 + $0x730] sm:$0xff]  }
 0x327   :  { %4557 = vmatprep.subr.bf16.mxu1 %v4899_v48 }
 0x328   :  { %4536 = vmatpush3.bf16.msra.mxu0 %v4898_v27  ;;  %v4948_v27 = vld [vmem:[%s6319_s5 + $0x7f0] sm:$0xff]  }
 0x329   :  { %4537 = vmatprep.subr.bf16.mxu0 %v4901_v22 }
 0x32a   :  { %4558 = vmatpush3.bf16.msra.mxu1 %v4900_v49  ;;  %v4950_v49 = vld [vmem:[%s6319_s5 + $0x778] sm:$0xff]  }
 0x32b   :  { %4559 = vmatprep.subr.bf16.mxu1 %v4903_v50 }
 0x32c   :  { %4538 = vmatpush3.bf16.msra.mxu0 %v4902_v45 }
 0x32d   :  { %4539 = vmatprep.subr.bf16.mxu0 %v4905_v51 }
 0x32e   :  { %4560 = vmatpush3.bf16.msra.mxu1 %v4904_v52 }
 0x32f   :  { %4561 = vmatprep.subr.bf16.mxu1 %v4907_v37 }
 0x330   :  { %4540 = vmatpush3.bf16.msra.mxu0 %v4906_v24  ;;  %v4949_v24 = vld [vmem:[%s6319_s5 + $0x7b0] sm:$0xff]  }
 0x331   :  { %4541 = vmatprep.subr.bf16.mxu0 %v4909_v53  ;;  %v4951_v53 = vld [vmem:[%s6319_s5 + $0x738] sm:$0xff]  }
 0x332   :  { %4562 = vmatpush3.bf16.msra.mxu1 %v4908_v38  ;;  %v4952_v38 = vld [vmem:[%s6319_s5 + $0x7f8] sm:$0xff]  }
 0x333   :  { %4563 = vmatprep.subr.bf16.mxu1 %v4911_v54  ;;  %v4953_v54 = vld [vmem:[%s6319_s5 + $0x7b8] sm:$0xff]   ;;  %s4982_s5 = smov [#allocation5]  }
 0x334   :  { %4542 = vmatpush3.bf16.msra.mxu0 %v4910_v46  ;;  %s3924_s2 = sshll.u32 %s4982_s5, 4  ;;  %s3925_s2 = int_to_ptr.vmem [resolvable:$true] %s3924_s2 }
 0x335   :  { %4543 = vmatprep.subr.bf16.mxu0 %v4913_v55  ;;  %v1217_v55 = vpack.c.bf16 %v6174_v63, %v6174_v63  ;;  %s4954_s20 = scalar_lea.vmem %s3925_s2, 32  ;;  %p4959_p1 = scmp.lt.s32.totalorder %s3925_s2, %s3925_s2 }
 0x336   :  { %4564 = vmatpush3.bf16.msra.mxu1 %v4912_v58  ;;  %p4955_p0 = scmp.ne.s32.totalorder %s3925_s2, %s4954_s20  ;;  %p4960_p2 = scmp.lt.s32.totalorder %s4954_s20, %s4954_s20 }
 0x337   :  { %4565 = vmatprep.subr.bf16.mxu1 %v4915_v61 }
 0x338   :  { %4544 = vmatpush3.bf16.msra.mxu0 %v4914_v59  ;;  %p4961_p3 = por %p4960_p2, %p4959_p1 }
 0x339   :  { %4545 = vmatprep.subr.bf16.mxu0 %v4917_v39 }
 0x33a   :  { %4566 = vmatpush3.bf16.msra.mxu1 %v4916_v0  ;;  %p4962_p4 = pnand %p4961_p3, %p4955_p0 }
 0x33b   :  { %4567 = vmatprep.subr.bf16.mxu1 %v4919_v25 }
 0x33c   :  { %4546 = vmatpush3.bf16.msra.mxu0 %v4918_v1 }
 0x33d   :  { %4575 = vmatprep.subr.bf16.mxu0 %v4921_v2 }
 0x33e   :  { %4568 = vmatpush3.bf16.msra.mxu1 %v4920_v4 }
 0x33f   :  { %3789 = vmatmul.mubr.bf16.vlgmr.msra.gmra.mrb[32].mxu0 %v1213_v6  ;;  %4597 = vmatprep.subr.bf16.mxu1 %v4923_v7 }
 0x340   :  { %4576 = vmatpush3.bf16.msra.mxu0 %v4922_v5  ;;  %3868 = vmatprep.mubr.bf16.mxu0 %v1218_v8 }
 0x341   :  { %4577 = vmatprep.subr.bf16.mxu0 %v4926_v33  ;;  %3829 = vmatmul.mubr.bf16.vlgmr.msra.gmra.mrb[36].mxu1 %v1215_v10 }
 0x342   :  { %4598 = vmatpush3.bf16.msra.mxu1 %v4924_v9  ;;  %3908 = vmatprep.mubr.bf16.mxu1 %v1220_v12 }
 0x343   :  { %4599 = vmatprep.subr.bf16.mxu1 %v4928_v11 }
 0x344   :  { %4578 = vmatpush3.bf16.msra.mxu0 %v4927_v62 }
 0x345   :  { %4579 = vmatprep.subr.bf16.mxu0 %v4930_v13 }
 0x346   :  { %4600 = vmatpush3.bf16.msra.mxu1 %v4929_v14 }
 0x347   :  { %4601 = vmatprep.subr.bf16.mxu1 %v4932_v18 }
 0x348   :  { %4580 = vmatpush3.bf16.msra.mxu0 %v4931_v15 }
 0x349   :  { %4581 = vmatprep.subr.bf16.mxu0 %v4934_v19 }
 0x34a   :  { %4602 = vmatpush3.bf16.msra.mxu1 %v4933_v20 }
 0x34b   :  { %4603 = vmatprep.subr.bf16.mxu1 %v4936_v21 }
 0x34c   :  { %4582 = vmatpush3.bf16.msra.mxu0 %v4935_v16 }
 0x34d   :  { %4583 = vmatprep.subr.bf16.mxu0 %v4938_v23 }
 0x34e   :  { %4604 = vmatpush3.bf16.msra.mxu1 %v4937_v26 }
 0x34f   :  { %4605 = vmatprep.subr.bf16.mxu1 %v4940_v28 }
 0x350   :  { %4584 = vmatpush3.bf16.msra.mxu0 %v4939_v17 }
 0x351   :  { %4585 = vmatprep.subr.bf16.mxu0 %v4942_v29 }
 0x352   :  { %v4283_v36 = vpop.f32.mrb[8].mxu0  ;;  %4606 = vmatpush3.bf16.msra.mxu1 %v4941_v30 }
 0x353   :  { %v4284_v42 = vpop.f32.mrb[9].mxu0  ;;  %4607 = vmatprep.subr.bf16.mxu1 %v4944_v32 }
 0x354   :  { %v4285_v43 = vadd.f32 %v4284_v42, %v4283_v36  ;;  %4586 = vmatpush3.bf16.msra.mxu0 %v4943_v31  ;;  %v4286_v44 = vpop.f32.mrb[10].mxu0  ;;  %v4305_v48 = vpop.f32.mrb[12].mxu1 }
 0x355   :  { %v4287_v22 = vpop.f32.mrb[11].mxu0  ;;  %4587 = vmatprep.subr.bf16.mxu0 %v4946_v34  ;;  %v4306_v50 = vpop.f32.mrb[13].mxu1 }
 0x356   :  { %v3311_v45 = vadd.f32 %v4285_v43, %v3972_v41  ;;  %v4307_v51 = vadd.f32 %v4306_v50, %v4305_v48  ;;  %4608 = vmatpush3.bf16.msra.mxu1 %v4945_v35  ;;  %v4308_v52 = vpop.f32.mrb[14].mxu1 }
 0x357   :  { %v4309_v37 = vpop.f32.mrb[15].mxu1  ;;  %4609 = vmatprep.subr.bf16.mxu1 %v4948_v27 }
 0x358   :  { %4588 = vmatpush3.bf16.msra.mxu0 %v4947_v47  ;;  %v3351_v46 = vadd.f32 %v4307_v51, %v3311_v45 }
 0x359   :  { %4589 = vmatprep.subr.bf16.mxu0 %v4950_v49 }
 0x35a   :  { %4610 = vmatpush3.bf16.msra.mxu1 %v4949_v24 }
 0x35b   :  { %4611 = vmatprep.subr.bf16.mxu1 %v4952_v38 }
 0x35c   :  { %4590 = vmatpush3.bf16.msra.mxu0 %v4951_v53 }
 0x35e   :  { %4612 = vmatpush3.bf16.msra.mxu1 %v4953_v54 }
 0x35f   :  { %3869 = vmatmul.mubr.bf16.vlgmr.msra.gmra.mrb[36].mxu0 %v1217_v55 }
 0x361   :  { %3909 = vmatmul.mubr.bf16.vlgmr.msra.gmra.mrb[40].mxu1 %v1219_v56 }
 0x372   :  { %v4327_v58 = vpop.f32.mrb[12].mxu0 }
 0x373   :  { %v4328_v59 = vpop.f32.mrb[13].mxu0 }
 0x374   :  { %v4329_v61 = vadd.f32 %v4328_v59, %v4327_v58  ;;  %v4330_v39 = vpop.f32.mrb[14].mxu0  ;;  %v4349_v57 = vpop.f32.mrb[16].mxu1 }
 0x375   :  { %v4331_v0 = vpop.f32.mrb[15].mxu0  ;;  %v4350_v25 = vpop.f32.mrb[17].mxu1 }
 0x376   :  { %v3391_v1 = vadd.f32 %v4329_v61, %v3351_v46  ;;  %v4351_v2 = vadd.f32 %v4350_v25, %v4349_v57  ;;  %v4352_v3 = vpop.f32.mrb[18].mxu1 }
 0x377   :  { %v4353_v4 = vpop.f32.mrb[19].mxu1 }
 0x378   :  { %v3431_v5 = vadd.f32 %v4351_v2, %v3391_v1 }
 0x392   :  { %v4371_v6 = vpop.f32.mrb[16].mxu0 }
 0x393   :  { %v4372_v63 = vpop.f32.mrb[17].mxu0 }
 0x394   :  { %v4373_v7 = vadd.f32 %v4372_v63, %v4371_v6  ;;  %v4374_v60 = vpop.f32.mrb[18].mxu0  ;;  %v4393_v33 = vpop.f32.mrb[20].mxu1 }
 0x395   :  { %v4375_v8 = vpop.f32.mrb[19].mxu0  ;;  %v4394_v9 = vpop.f32.mrb[21].mxu1 }
 0x396   :  { %v3471_v40 = vadd.f32 %v4373_v7, %v3431_v5  ;;  %v4395_v10 = vadd.f32 %v4394_v9, %v4393_v33  ;;  %v4396_v62 = vpop.f32.mrb[22].mxu1 }
 0x397   :  { %v4397_v11 = vpop.f32.mrb[23].mxu1 }
 0x398   :  { %v3511_v12 = vadd.f32 %v4395_v10, %v3471_v40 }
 0x3b2   :  { %v4415_v13 = vpop.f32.mrb[20].mxu0 }
 0x3b3   :  { %v4416_v14 = vpop.f32.mrb[21].mxu0 }
 0x3b4   :  { %v4417_v15 = vadd.f32 %v4416_v14, %v4415_v13  ;;  %v4418_v18 = vpop.f32.mrb[22].mxu0  ;;  %v4437_v19 = vpop.f32.mrb[24].mxu1 }
 0x3b5   :  { %v4419_v20 = vpop.f32.mrb[23].mxu0  ;;  %v4438_v21 = vpop.f32.mrb[25].mxu1 }
 0x3b6   :  { %v3551_v16 = vadd.f32 %v4417_v15, %v3511_v12  ;;  %v4439_v23 = vadd.f32 %v4438_v21, %v4437_v19  ;;  %v4440_v26 = vpop.f32.mrb[26].mxu1 }
 0x3b7   :  { %v4441_v17 = vpop.f32.mrb[27].mxu1 }
 0x3b8   :  { %v3591_v28 = vadd.f32 %v4439_v23, %v3551_v16 }
 0x3d2   :  { %v4459_v29 = vpop.f32.mrb[24].mxu0 }
 0x3d3   :  { %v4460_v30 = vpop.f32.mrb[25].mxu0 }
 0x3d4   :  { %v4461_v31 = vadd.f32 %v4460_v30, %v4459_v29  ;;  %v4462_v32 = vpop.f32.mrb[26].mxu0  ;;  %v4481_v34 = vpop.f32.mrb[28].mxu1 }
 0x3d5   :  { %v4463_v36 = vpop.f32.mrb[27].mxu0  ;;  %v4482_v42 = vpop.f32.mrb[29].mxu1 }
 0x3d6   :  { %v3631_v41 = vadd.f32 %v4461_v31, %v3591_v28  ;;  %v4483_v35 = vadd.f32 %v4482_v42, %v4481_v34  ;;  %v4484_v43 = vpop.f32.mrb[30].mxu1 }
 0x3d7   :  { %v4485_v44 = vpop.f32.mrb[31].mxu1 }
 0x3d8   :  { %v3671_v47 = vadd.f32 %v4483_v35, %v3631_v41 }
 0x3f2   :  { %v4503_v27 = vpop.f32.mrb[28].mxu0 }
 0x3f3   :  { %v4504_v48 = vpop.f32.mrb[29].mxu0 }
 0x3f4   :  { %v4505_v22 = vadd.f32 %v4504_v48, %v4503_v27  ;;  %v4506_v49 = vpop.f32.mrb[30].mxu0  ;;  %v4525_v45 = vpop.f32.mrb[32].mxu1 }
 0x3f5   :  { %v4507_v50 = vpop.f32.mrb[31].mxu0  ;;  %v4526_v52 = vpop.f32.mrb[33].mxu1 }
 0x3f6   :  { %v3711_v51 = vadd.f32 %v4505_v22, %v3671_v47  ;;  %v4527_v24 = vadd.f32 %v4526_v52, %v4525_v45  ;;  %v4528_v37 = vpop.f32.mrb[34].mxu1 }
 0x3f7   :  { %v4529_v53 = vpop.f32.mrb[35].mxu1 }
 0x3f8   :  { %v3751_v38 = vadd.f32 %v4527_v24, %v3711_v51 }
 0x412   :  { %v4547_v46 = vpop.f32.mrb[32].mxu0 }
 0x413   :  { %v4548_v54 = vpop.f32.mrb[33].mxu0 }
 0x414   :  { %v4549_v55 = vadd.f32 %v4548_v54, %v4547_v46  ;;  %v4550_v56 = vpop.f32.mrb[34].mxu0  ;;  %v4569_v58 = vpop.f32.mrb[36].mxu1 }
 0x415   :  { %v4551_v59 = vpop.f32.mrb[35].mxu0  ;;  %v4570_v39 = vpop.f32.mrb[37].mxu1 }
 0x416   :  { %v3791_v61 = vadd.f32 %v4549_v55, %v3751_v38  ;;  %v4571_v57 = vadd.f32 %v4570_v39, %v4569_v58  ;;  %v4572_v0 = vpop.f32.mrb[38].mxu1 }
 0x417   :  { %v4573_v1 = vpop.f32.mrb[39].mxu1 }
 0x418   :  { %v3831_v25 = vadd.f32 %v4571_v57, %v3791_v61 }
 0x432   :  { %v4591_v2 = vpop.f32.mrb[36].mxu0 }
 0x433   :  { %v4592_v3 = vpop.f32.mrb[37].mxu0 }
 0x434   :  { %v4593_v4 = vadd.f32 %v4592_v3, %v4591_v2  ;;  %v4594_v5 = vpop.f32.mrb[38].mxu0  ;;  %v4613_v6 = vpop.f32.mrb[40].mxu1 }
 0x435   :  { %v4595_v63 = vpop.f32.mrb[39].mxu0  ;;  %v4614_v60 = vpop.f32.mrb[41].mxu1 }
 0x436   :  { %v3871_v7 = vadd.f32 %v4593_v4, %v3831_v25  ;;  %v4615_v33 = vadd.f32 %v4614_v60, %v4613_v6  ;;  %v4616_v8 = vpop.f32.mrb[42].mxu1 }
 0x437   :  { %v4617_v40 = vpop.f32.mrb[43].mxu1 }
 0x438   :  { %v3911_v9 = vadd.f32 %v4615_v33, %v3871_v7 }
 0x43a   :  { %3917 = vst.msk [vmem:[#allocation5] sm:$0x3] %vm3916_vm6, %v3911_v9 }
 0x43b   :  { %4965 = shalt.err (!%p4962_p4)
}
 0x43c   :  { %s4966_s22 = scalar_lea.hbm %s6321_s7, 32 }
 0x43d   :  { %p4967_p5 = scmp.ne.s32.totalorder %s6321_s7, %s4966_s22  ;;  %p4970_p6 = scmp.lt.u32.totalorder %s4966_s22, %s6321_s7 }
 0x43f   :  { %p4972_p7 = pnand %p4970_p6, %p4967_p5 }
 0x441   :  { %4975 = shalt.err (!%p4972_p7)
}
 0x442   :  { %3927 = dma.vmem_to_hbm [thread:$0]  %s3925_s2, 32, %s6321_s7, [#allocation6]  }
 0x443   :  { %4976 = dma.done.wait [#allocation6], 32  }
 0x444   :  { %4977 = vsyncadd [#allocation6], 4294967264 }
 0x445   :  { %3931 = vsyncpa [#allocation6], 1 }

</bundles_post_ra>
